<compile_context>
chip_gen: v5e
topology: v5e:2x2
jax: 0.10.0
libtpu: 0.0.40
codegen_flags: <defaults>
</compile_context>

<pallas_src>
import jax
import jax.numpy as jnp
from jax.experimental import pallas as pl
from jax.experimental.pallas import tpu as pltpu

GLOBAL_FEAT = 1024
POSE_DIM = 63
BETA_DIM = 10
BN_EPS = 1e-5


def pointnet_kernel(x_ref, w1_ref, b1_ref, w2_ref, b2_ref, w3_ref, feat_ref):
    """One (batch b, point-tile pt) grid step.

    x_ref    : (1, TN, 3)  f32   streamed point tile (always full — wrapper pads N)
    w1/b1    : (3, 64) f32 / (1, 64) f32          (BN folded)
    w2/b2    : (64, 128) bf16 / (1, 128) f32      (BN folded)
    w3       : (128, 1024) bf16                   (BN folded; bias+ReLU hoisted out)
    feat_ref : (1, 1, 1024) f32   output == running max over point tiles
    """
    pt = pl.program_id(1)

    x = x_ref[0]                                         # (TN, 3) f32

    # mlp1: Conv1d(3, 64, 1) + BN + ReLU.  K=3 would waste the MXU contraction
    # width, so do three VPU broadcast FMAs instead (BN folded into w1/b1).
    w1 = w1_ref[...]
    h = (x[:, 0:1] * w1[0:1, :] + x[:, 1:2] * w1[1:2, :] + x[:, 2:3] * w1[2:3, :]
         + b1_ref[...])
    h = jnp.maximum(h, 0.0)                              # (TN, 64) f32

    # mlp2: Conv1d(64, 128, 1) + BN + ReLU — bf16 MXU matmul, f32 accumulate.
    h = jnp.dot(h.astype(jnp.bfloat16), w2_ref[...],
                preferred_element_type=jnp.float32) + b2_ref[...]
    h = jnp.maximum(h, 0.0)                              # (TN, 128) f32

    # mlp3: Conv1d(128, 1024, 1) — dominant bf16 MXU matmul.  The bias-add and ReLU
    # commute with the per-point max (bias is row-constant, ReLU is monotonic), so
    # they are applied once per batch in the wrapper instead of per tile here.
    z = jnp.dot(h.astype(jnp.bfloat16), w3_ref[...],
                preferred_element_type=jnp.float32)      # (TN, 1024) f32

    tile_max = jnp.max(z, axis=0, keepdims=True)         # (1, 1024)

    @pl.when(pt == 0)
    def _():
        feat_ref[...] = jnp.full(feat_ref.shape, -jnp.inf, feat_ref.dtype)

    feat_ref[...] = jnp.maximum(feat_ref[...],
                                tile_max.reshape(1, 1, GLOBAL_FEAT))


def pointnet_encoder(x, params, *, tn=1024):
    """x: (B, N, 3) float32.  params: folded weights/biases.  Returns (pose63, betas)."""
    B, N, _ = x.shape
    w1, b1, w2, b2, w3, b3, wp, bp, wb, bb = params

    # Point-tile size: multiple of 8 sublanes, no larger than the (rounded-up) cloud.
    tn = max(8, (int(tn) // 8) * 8)
    tn = min(tn, (N + 7) // 8 * 8)
    nt = pl.cdiv(N, tn)
    n_pad = nt * tn

    # Pad the cloud up to a multiple of TN with duplicates of the first point.
    # Duplicated points can never change a max, so no in-kernel masking is needed.
    if n_pad != N:
        pad = jnp.broadcast_to(x[:, :1, :], (B, n_pad - N, 3))
        x = jnp.concatenate([x, pad], axis=1)

    grid_spec = pltpu.PrefetchScalarGridSpec(
        num_scalar_prefetch=0,
        grid=(B, nt),
        in_specs=[
            pl.BlockSpec((1, tn, 3), lambda b, p: (b, p, 0)),            # x (streamed)
            pl.BlockSpec((3, 64), lambda b, p: (0, 0)),                  # w1 (resident)
            pl.BlockSpec((1, 64), lambda b, p: (0, 0)),                  # b1
            pl.BlockSpec((64, 128), lambda b, p: (0, 0)),                # w2 (bf16)
            pl.BlockSpec((1, 128), lambda b, p: (0, 0)),                 # b2
            pl.BlockSpec((128, GLOBAL_FEAT), lambda b, p: (0, 0)),       # w3 (bf16)
        ],
        out_specs=pl.BlockSpec((1, 1, GLOBAL_FEAT), lambda b, p: (b, 0, 0)),
    )

    feat = pl.pallas_call(
        pointnet_kernel,
        out_shape=jax.ShapeDtypeStruct((B, 1, GLOBAL_FEAT), jnp.float32),
        grid_spec=grid_spec,
        compiler_params=pltpu.CompilerParams(
            dimension_semantics=("parallel", "arbitrary"),
            vmem_limit_bytes=64 * 1024 * 1024,
        ),
    )(x, w1, b1, w2, b2, w3)

    # Hoisted mlp3 epilogue (bias + ReLU) and the tiny fc heads, batched at M=B.
    g = jnp.maximum(feat.reshape(B, GLOBAL_FEAT) + b3, 0.0)
    pose63 = jnp.dot(g, wp, preferred_element_type=jnp.float32) + bp
    betas = jnp.dot(g, wb, preferred_element_type=jnp.float32) + bb
    return pose63, betas


def _fold_bn(w, b, gamma, beta, mean, var):
    """Fold eval-mode BatchNorm into a preceding 1x1 conv (w: (Cin, Cout))."""
    scale = gamma / jnp.sqrt(var + BN_EPS)               # (Cout,)
    return w * scale[None, :], (b - mean) * scale + beta


def make_params(key):
    """Deterministic synthetic parameters with the module's shapes (BN folded)."""
    ks = jax.random.split(key, 16)

    def conv_bn(kw, kb, kg, kbe, cin, cout):
        w = jax.random.normal(kw, (cin, cout), jnp.float32) * 0.05   # Conv1d weight^T
        b = jax.random.normal(kb, (cout,), jnp.float32) * 0.05       # Conv1d bias
        gamma = 1.0 + 0.1 * jax.random.normal(kg, (cout,), jnp.float32)
        beta = 0.1 * jax.random.normal(kbe, (cout,), jnp.float32)
        mean = jnp.zeros((cout,), jnp.float32)                       # running_mean init
        var = jnp.ones((cout,), jnp.float32)                         # running_var init
        wf, bf = _fold_bn(w, b, gamma, beta, mean, var)
        return wf, bf.reshape(1, cout)

    w1, b1 = conv_bn(ks[0], ks[1], ks[2], ks[3], 3, 64)
    w2, b2 = conv_bn(ks[4], ks[5], ks[6], ks[7], 64, 128)
    w3, b3 = conv_bn(ks[8], ks[9], ks[10], ks[11], 128, GLOBAL_FEAT)

    wp = jax.random.normal(ks[12], (GLOBAL_FEAT, POSE_DIM), jnp.float32) * 0.02
    bp = jax.random.normal(ks[13], (POSE_DIM,), jnp.float32) * 0.02
    wb = jax.random.normal(ks[14], (GLOBAL_FEAT, BETA_DIM), jnp.float32) * 0.02
    bb = jax.random.normal(ks[15], (BETA_DIM,), jnp.float32) * 0.02

    # The two big matmuls run in bf16 on the MXU (f32 accumulate).
    return (w1, b1, w2.astype(jnp.bfloat16), b2,
            w3.astype(jnp.bfloat16), b3, wp, bp, wb, bb)


def reference(x, params):
    """Pure-JAX reference with the module's op order (bias+ReLU before the max)."""
    w1, b1, w2, b2, w3, b3, wp, bp, wb, bb = params
    B, N, _ = x.shape
    xf = x.reshape(B * N, 3).astype(jnp.float32)
    h = xf[:, 0:1] * w1[0:1] + xf[:, 1:2] * w1[1:2] + xf[:, 2:3] * w1[2:3] + b1
    h = jnp.maximum(h, 0.0)
    h = jnp.maximum(jnp.dot(h.astype(jnp.bfloat16), w2,
                            preferred_element_type=jnp.float32) + b2, 0.0)
    h = jnp.maximum(jnp.dot(h.astype(jnp.bfloat16), w3,
                            preferred_element_type=jnp.float32) + b3, 0.0)
    g = h.reshape(B, N, GLOBAL_FEAT).max(axis=1)
    pose63 = jnp.dot(g, wp, preferred_element_type=jnp.float32) + bp
    betas = jnp.dot(g, wb, preferred_element_type=jnp.float32) + bb
    return pose63, betas


if __name__ == "__main__":
    key = jax.random.PRNGKey(0)
    k_x, k_p = jax.random.split(key)

    # Small shapes: 2 clouds of 200 xyz points.  N is deliberately NOT a multiple of
    # the point tile so the wrapper-side duplicate-point padding path is exercised.
    B, N = 2, 200
    x = jax.random.normal(k_x, (B, N, 3), jnp.float32)
    params = make_params(k_p)

    pose63, betas = pointnet_encoder(x, params, tn=128)   # grid = (2 batches, 2 point tiles)
    jax.block_until_ready((pose63, betas))

    ref_pose, ref_beta = reference(x, params)
    assert pose63.shape == (B, POSE_DIM) and betas.shape == (B, BETA_DIM)
    assert jnp.allclose(pose63, ref_pose, atol=1e-2, rtol=1e-2), \
        float(jnp.max(jnp.abs(pose63 - ref_pose)))
    assert jnp.allclose(betas, ref_beta, atol=1e-2, rtol=1e-2), \
        float(jnp.max(jnp.abs(betas - ref_beta)))

    print("KERNEL_OK")
</pallas_src>

<mosaic_0001>
module attributes {stable_mosaic.version = 11 : i64} {
  func.func @pointnet_kernel(%arg0: i32, %arg1: i32, %arg2: memref<1x128x3xf32, #tpu.memory_space<vmem>>, %arg3: memref<3x64xf32, #tpu.memory_space<vmem>>, %arg4: memref<1x64xf32, #tpu.memory_space<vmem>>, %arg5: memref<64x128xbf16, #tpu.memory_space<vmem>>, %arg6: memref<1x128xf32, #tpu.memory_space<vmem>>, %arg7: memref<128x1024xbf16, #tpu.memory_space<vmem>>, %arg8: memref<1x1x1024xf32, #tpu.memory_space<vmem>>) attributes {dimension_semantics = [#tpu.dimension_semantics<parallel>, #tpu.dimension_semantics<arbitrary>], iteration_bounds = array<i64: 2, 2>, scalar_prefetch = 0 : i64, scratch_operands = 0 : i64, tpu.core_type = #tpu.core_type<tc>, window_params = [{transform_indices = @transform_0, window_bounds = array<i64: 1, 128, 3>}, {pipeline_mode = #tpu.pipeline_mode<synchronous>, transform_indices = @transform_1, window_bounds = array<i64: 3, 64>}, {pipeline_mode = #tpu.pipeline_mode<synchronous>, transform_indices = @transform_2, window_bounds = array<i64: 1, 64>}, {pipeline_mode = #tpu.pipeline_mode<synchronous>, transform_indices = @transform_3, window_bounds = array<i64: 64, 128>}, {pipeline_mode = #tpu.pipeline_mode<synchronous>, transform_indices = @transform_4, window_bounds = array<i64: 1, 128>}, {pipeline_mode = #tpu.pipeline_mode<synchronous>, transform_indices = @transform_5, window_bounds = array<i64: 128, 1024>}, {transform_indices = @transform_6, window_bounds = array<i64: 1, 1, 1024>}]} {
    %c0 = arith.constant 0 : index
    %c0_0 = arith.constant 0 : index
    %c0_1 = arith.constant 0 : index
    %0 = vector.load %arg2[%c0, %c0_0, %c0_1] : memref<1x128x3xf32, #tpu.memory_space<vmem>>, vector<1x128x3xf32>
    %1 = vector.shape_cast %0 : vector<1x128x3xf32> to vector<128x3xf32>
    %c0_2 = arith.constant 0 : index
    %c0_3 = arith.constant 0 : index
    %2 = vector.load %arg3[%c0_2, %c0_3] : memref<3x64xf32, #tpu.memory_space<vmem>>, vector<3x64xf32>
    %3 = vector.extract_strided_slice %1 {offsets = [0, 0], sizes = [128, 1], strides = [1, 1]} : vector<128x3xf32> to vector<128x1xf32>
    %4 = vector.extract_strided_slice %2 {offsets = [0, 0], sizes = [1, 64], strides = [1, 1]} : vector<3x64xf32> to vector<1x64xf32>
    %5 = vector.broadcast %3 : vector<128x1xf32> to vector<128x64xf32>
    %6 = vector.broadcast %4 : vector<1x64xf32> to vector<128x64xf32>
    %7 = arith.mulf %5, %6 : vector<128x64xf32>
    %8 = vector.extract_strided_slice %1 {offsets = [0, 1], sizes = [128, 1], strides = [1, 1]} : vector<128x3xf32> to vector<128x1xf32>
    %9 = vector.extract_strided_slice %2 {offsets = [1, 0], sizes = [1, 64], strides = [1, 1]} : vector<3x64xf32> to vector<1x64xf32>
    %10 = vector.broadcast %8 : vector<128x1xf32> to vector<128x64xf32>
    %11 = vector.broadcast %9 : vector<1x64xf32> to vector<128x64xf32>
    %12 = arith.mulf %10, %11 : vector<128x64xf32>
    %13 = arith.addf %7, %12 : vector<128x64xf32>
    %14 = vector.extract_strided_slice %1 {offsets = [0, 2], sizes = [128, 1], strides = [1, 1]} : vector<128x3xf32> to vector<128x1xf32>
    %15 = vector.extract_strided_slice %2 {offsets = [2, 0], sizes = [1, 64], strides = [1, 1]} : vector<3x64xf32> to vector<1x64xf32>
    %16 = vector.broadcast %14 : vector<128x1xf32> to vector<128x64xf32>
    %17 = vector.broadcast %15 : vector<1x64xf32> to vector<128x64xf32>
    %18 = arith.mulf %16, %17 : vector<128x64xf32>
    %19 = arith.addf %13, %18 : vector<128x64xf32>
    %c0_4 = arith.constant 0 : index
    %c0_5 = arith.constant 0 : index
    %20 = vector.load %arg4[%c0_4, %c0_5] : memref<1x64xf32, #tpu.memory_space<vmem>>, vector<1x64xf32>
    %21 = vector.broadcast %20 : vector<1x64xf32> to vector<128x64xf32>
    %22 = arith.addf %19, %21 : vector<128x64xf32>
    %cst = arith.constant 0.000000e+00 : f32
    %23 = vector.broadcast %cst : f32 to vector<128x64xf32>
    %24 = arith.maximumf %22, %23 : vector<128x64xf32>
    %25 = arith.truncf %24 : vector<128x64xf32> to vector<128x64xbf16>
    %c0_6 = arith.constant 0 : index
    %c0_7 = arith.constant 0 : index
    %26 = vector.load %arg5[%c0_6, %c0_7] : memref<64x128xbf16, #tpu.memory_space<vmem>>, vector<64x128xbf16>
    %cst_8 = arith.constant dense<0.000000e+00> : vector<128x128xf32>
    %27 = tpu.matmul %25, %26, %cst_8 {dimension_numbers = #tpu.dot_dimension_numbers<[1], [0], [0], [1], [0, 0, 1, 1], [], []>} : vector<128x64xbf16>, vector<64x128xbf16>, vector<128x128xf32> -> vector<128x128xf32>
    %c0_9 = arith.constant 0 : index
    %c0_10 = arith.constant 0 : index
    %28 = vector.load %arg6[%c0_9, %c0_10] : memref<1x128xf32, #tpu.memory_space<vmem>>, vector<1x128xf32>
    %29 = vector.broadcast %28 : vector<1x128xf32> to vector<128x128xf32>
    %30 = arith.addf %27, %29 : vector<128x128xf32>
    %cst_11 = arith.constant 0.000000e+00 : f32
    %31 = vector.broadcast %cst_11 : f32 to vector<128x128xf32>
    %32 = arith.maximumf %30, %31 : vector<128x128xf32>
    %33 = arith.truncf %32 : vector<128x128xf32> to vector<128x128xbf16>
    %c0_12 = arith.constant 0 : index
    %c0_13 = arith.constant 0 : index
    %34 = vector.load %arg7[%c0_12, %c0_13] : memref<128x1024xbf16, #tpu.memory_space<vmem>>, vector<128x1024xbf16>
    %cst_14 = arith.constant dense<0.000000e+00> : vector<128x1024xf32>
    %35 = tpu.matmul %33, %34, %cst_14 {dimension_numbers = #tpu.dot_dimension_numbers<[1], [0], [0], [1], [0, 0, 1, 1], [], []>} : vector<128x128xbf16>, vector<128x1024xbf16>, vector<128x1024xf32> -> vector<128x1024xf32>
    %cst_15 = arith.constant dense<0xFF800000> : vector<1024xf32>
    %36 = vector.multi_reduction <maximumf>, %35, %cst_15 [0] : vector<128x1024xf32> to vector<1024xf32>
    %37 = vector.shape_cast %36 : vector<1024xf32> to vector<1x1024xf32>
    %c0_i32 = arith.constant 0 : i32
    %38 = arith.cmpi eq, %arg1, %c0_i32 : i32
    %39 = arith.extui %38 : i1 to i32
    %c0_i32_16 = arith.constant 0 : i32
    %40 = arith.cmpi ne, %39, %c0_i32_16 : i32
    scf.if %40 {
      %cst_23 = arith.constant 0xFF800000 : f32
      %45 = vector.broadcast %cst_23 : f32 to vector<1x1x1024xf32>
      %c0_24 = arith.constant 0 : index
      %c0_25 = arith.constant 0 : index
      %c0_26 = arith.constant 0 : index
      %46 = vector.load %arg8[%c0_24, %c0_25, %c0_26] : memref<1x1x1024xf32, #tpu.memory_space<vmem>>, vector<1x1x1024xf32>
      tpu.vector_store %arg8[%c0_24, %c0_25, %c0_26], %45 {strides = array<i32>} : memref<1x1x1024xf32, #tpu.memory_space<vmem>>, vector<1x1x1024xf32>,
    } else {
    }
    %c0_17 = arith.constant 0 : index
    %c0_18 = arith.constant 0 : index
    %c0_19 = arith.constant 0 : index
    %41 = vector.load %arg8[%c0_17, %c0_18, %c0_19] : memref<1x1x1024xf32, #tpu.memory_space<vmem>>, vector<1x1x1024xf32>
    %42 = vector.shape_cast %37 : vector<1x1024xf32> to vector<1x1x1024xf32>
    %43 = arith.maximumf %41, %42 : vector<1x1x1024xf32>
    %c0_20 = arith.constant 0 : index
    %c0_21 = arith.constant 0 : index
    %c0_22 = arith.constant 0 : index
    %44 = vector.load %arg8[%c0_20, %c0_21, %c0_22] : memref<1x1x1024xf32, #tpu.memory_space<vmem>>, vector<1x1x1024xf32>
    tpu.vector_store %arg8[%c0_20, %c0_21, %c0_22], %43 {strides = array<i32>} : memref<1x1x1024xf32, #tpu.memory_space<vmem>>, vector<1x1x1024xf32>,
    return
  }
  func.func @transform_0(%arg0: i32, %arg1: i32) -> (i32, i32, i32) {
    %c0_i32 = arith.constant 0 : i32
    %c0_i32_0 = arith.constant 0 : i32
    return %arg0, %arg1, %c0_i32 : i32, i32, i32
  }
  func.func @transform_1(%arg0: i32, %arg1: i32) -> (i32, i32) {
    %c0_i32 = arith.constant 0 : i32
    %c0_i32_0 = arith.constant 0 : i32
    %c0_i32_1 = arith.constant 0 : i32
    return %c0_i32, %c0_i32_0 : i32, i32
  }
  func.func @transform_2(%arg0: i32, %arg1: i32) -> (i32, i32) {
    %c0_i32 = arith.constant 0 : i32
    %c0_i32_0 = arith.constant 0 : i32
    %c0_i32_1 = arith.constant 0 : i32
    return %c0_i32, %c0_i32_0 : i32, i32
  }
  func.func @transform_3(%arg0: i32, %arg1: i32) -> (i32, i32) {
    %c0_i32 = arith.constant 0 : i32
    %c0_i32_0 = arith.constant 0 : i32
    %c0_i32_1 = arith.constant 0 : i32
    return %c0_i32, %c0_i32_0 : i32, i32
  }
  func.func @transform_4(%arg0: i32, %arg1: i32) -> (i32, i32) {
    %c0_i32 = arith.constant 0 : i32
    %c0_i32_0 = arith.constant 0 : i32
    %c0_i32_1 = arith.constant 0 : i32
    return %c0_i32, %c0_i32_0 : i32, i32
  }
  func.func @transform_5(%arg0: i32, %arg1: i32) -> (i32, i32) {
    %c0_i32 = arith.constant 0 : i32
    %c0_i32_0 = arith.constant 0 : i32
    %c0_i32_1 = arith.constant 0 : i32
    return %c0_i32, %c0_i32_0 : i32, i32
  }
  func.func @transform_6(%arg0: i32, %arg1: i32) -> (i32, i32, i32) {
    %c0_i32 = arith.constant 0 : i32
    %c0_i32_0 = arith.constant 0 : i32
    %c0_i32_1 = arith.constant 0 : i32
    return %arg0, %c0_i32, %c0_i32_0 : i32, i32, i32
  }
}

</mosaic_0001>

<bundles_post_ra>
// kernel: tpu_custom_call.1
= control target key start
LH: loop header
LB: loop body
LE: loop exit
PB: predicated region body
PF: predicated region fallthrough
CT: control target
= control target key end

     0   :  { %s3341_s0 = inlined_call_operand.vmem [shape: f32[2,256,3], index: 0, kind: input, shape index: {}]   ;;  %s3342_s1 = inlined_call_operand.vmem [shape: f32[3,64], index: 1, kind: input, shape index: {}]   ;;  %s3343_s2 = inlined_call_operand.vmem [shape: f32[1,64], index: 2, kind: input, shape index: {}]   ;;  %s3344_s3 = inlined_call_operand.hbm [shape: bf16[64,128], index: 3, kind: input, shape index: {}]   ;;  %s3345_s4 = inlined_call_operand.vmem [shape: f32[1,128], index: 4, kind: input, shape index: {}]   ;;  %s3346_s5 = inlined_call_operand.vmem [shape: bf16[128,1024], index: 5, kind: input, shape index: {}]   ;;  %s3347_s6 = inlined_call_operand.hbm [shape: f32[2,1,1024], index: 6, kind: output, shape index: {}]  }
   0x1   :  { %3349 = sst [smem:[#allocation8_spill]] %s3341_s0 }
   0x2   :  { %11 = vsyncpa [#allocation3], 0 }
   0x3   :  { %12 = vsyncpa [#allocation4], 0 }
   0x4   :  { %14 = vsyncpa [#allocation4 + $0x1], 0  ;;  %s2545_s21 = smov 0   ;;  %s2547_s22 = smov 0  }
   0x5   :  { %s2549_s23 = smov 0   ;;  %s2551_s24 = smov 0  }
   0x6   :  { %s2553_s25 = smov 0   ;;  %s2555_s26 = smov 0  }
   0x7   :  { %s2557_s27 = smov 0   ;;  %s2559_s28 = smov 0  }
   0x8 LB: > { %s1868_s29 = sadd.s32 4294967295, %s2501_s28   ;;  %s1869_s30 = sadd.s32 4294967294, %s2501_s28   ;;  %s2501_s28 = sphi %s2559_s28, %s20_s28   ;;  %s2497_s27 = sphi %s2557_s27, %s3361_s27   ;;  %s2493_s26 = sphi %s2555_s26, %s3360_s26   ;;  %s2489_s25 = sphi %s2553_s25, %s3359_s25   ;;  %s2485_s24 = sphi %s2551_s24, %s3358_s24   ;;  %s2481_s23 = sphi %s2549_s23, %s3357_s23   ;;  %s2477_s22 = sphi %s2547_s22, %s3356_s22   ;;  %s2473_s21 = sphi %s2545_s21, %s3355_s21  }
   0x9   : > { %s29_s7 = sadd.s32 1, %s2493_s26  ;;  %s32_s8 = sadd.s32 1, %s2497_s27 }
   0xa   : > { %p30_p0 = scmp.ge.s32.totalorder %s29_s7, 2  ;;  %s172_s9 = sadd.s32 1, %s2481_s23 }
   0xb   : > { %p182_p1 = scmp.ne.s32.totalorder %s2481_s23, %s2477_s22  ;;  %p183_p2 = scmp.eq.s32.totalorder %s1868_s29, 3 }
   0xc   : > { %s3363_s7 = smov (%p30_p0, %s29_s7), 0  ;;  %s3365_s8 = smov (!%p30_p0, %s32_s8), %s2497_s27 }
   0xd   : > { %p2595_p3 = por %p183_p2, %p182_p1  ;;  %p188_p4 = scmp.ne.s32.totalorder %s2477_s22, %s2473_s21 }
   0xe   : > { %p34_p5 = scmp.ge.s32.totalorder %s3365_s8, 2  ;;  %p189_p6 = scmp.eq.s32.totalorder %s1869_s30, 3 }
   0xf   : > { %p1870_p7 = scmp.ge.s32.totalorder %s2501_s28, 1  ;;  %p196_p8 = scmp.lt.s32.totalorder %s2501_s28, 5 }
  0x10   : > { %s3367_s8 = smov (%p34_p5, %s3365_s8), 0  ;;  %p2605_p9 = por %p189_p6, %p188_p4 }
  0x11   : > { %p2609_p10 = pnand %p1870_p7, %p196_p8  ;;  %s169_s13 = ssub.s32 %s2497_s27, %s3367_s8 }
  0x12   : > { %p170_p11 = scmp.eq.s32.totalorder %s169_s13, 0  ;;  %p2258_p13 = scmp.eq.s32.totalorder %s1868_s29, 0 }
  0x13   : > { %p2250_p12 = pneg %p2609_p10  ;;  %s213_s16 = sshll.u32 %s3344_s3, 4  ;;  %s214_s16 = int_to_ptr.hbm [resolvable:$true] %s213_s16 }
  0x14   : > { %s2621_s17 = scalar_select %p170_p11, %s2481_s23, %s172_s9  }
  0x15   : > { %s2503_s18 = smov [#allocation2]   ;;  %p2251_p0 = pnand %p2258_p13, %p2250_p12 }
  0x16   : > { %s215_s19 = sshll.u32 %s2503_s18, 4  ;;  %s2504_s20 = smov 64   ;;  %s216_s19 = int_to_ptr.vmem [resolvable:$true] %s215_s19 }
  0x17   : > { %s2505_s30 = smov 4   ;;  %250 = sbr.rel (%p2609_p10) target bundleno = 763 (0x2fb), region = 44 }
  0x18   : > { %2253 = dma.hbm_to_vmem [thread:$0]  (!%p2251_p0), %s214_s16, 512, %s216_s19, [#allocation3], %s2504_s20, %s2504_s20, %s2505_s30  }
  0x1c   : > { %2464 = dma.done.wait (%p2258_p13), [#allocation3], 512  }
  0x1d   : > { %2466 = vsyncadd (%p2258_p13), [#allocation3], 4294966784  ;;  %s1876_s29 = sshll.u32 %s2485_s24, 4  ;;  %p286_p1 = scmp.lt.s32.totalorder %s2489_s25, 1  ;;  %v2506_v0 = vmov 1   ;;  %v2507_v1 = vmov 0  }
  0x1e   : > { %2333 = vset.pattern.permute.xlu1 %v2506_v0  ;;  %2332 = vset.pattern.permute.xlu0 %v2507_v1  ;;  %p288_p2 = scmp.lt.s32.totalorder %s1876_s29, 31  ;;  %s3348_s9 = sand.u32 1, %s2477_s22   ;;  %v2508_v2 = vmov 2   ;;  %v2167_v16 = vld [vmem:[#allocation2 + $0x18] sm:$0xff]  ;;  %v2166_v17 = vld [vmem:[#allocation2 + $0x10] sm:$0xff]  ;;  %v2165_v19 = vld [vmem:[#allocation2 + $0x8] sm:$0xff] }
  0x1f   : > { %s287_s13 = scalar_select %p286_p1, %s2489_s25, 1  ;;  %2334 = vset.pattern.permute.xlu2 %v2508_v2  ;;  %713 = vmatpush.bf16.msra.mxu0 %v2167_v16  ;;  %v2164_v21 = vld [vmem:[#allocation2] sm:$0xff]  ;;  %vm684_vm0 = vcmask 523264  }
  0x20   : > { %s3369_s29 = smov (!%p288_p2, %s1876_s29), 31  ;;  %s2634_s14 = sshll.u32 %s3348_s9, 3  ;;  %2232 = vmatpush.bf16.msra.mxu1 %v2167_v16  ;;  %2233 = vmatpush.bf16.msra.mxu2 %v2167_v16  ;;  %v312_v24 = vld [vmem:[%s3342_s1] sm:$0x7] }
  0x21   : > { %s1877_s12 = sshll.u32 %s287_s13, 5  ;;  %s3353_s0 = sld [smem:[#allocation8_spill]]  ;;  %2234 = vmatpush.bf16.msra.mxu3 %v2167_v16  ;;  %v2692_v25 = vperm.slane %v312_v24, 1  ;;  %v2694_v26 = vperm.slane %v312_v24, 0  ;;  %v2696_v29 = vperm.slane %v312_v24, 2 }
  0x22   : > { %s291_s15 = sadd.s32 %s1877_s12, %s3369_s29  ;;  %v2709_v40 = vld [vmem:[%s3343_s2] ss:$0 sm:$0xff]  ;;  %s3286_s30 = scalar_lea.vmem [#allocation5], %s2634_s14 }
  0x23   : > { %s1878_s16 = sshll.u32 %s291_s15, 3  ;;  %714 = vmatpush.bf16.msra.mxu0 %v2166_v17  ;;  %p2159_p4 = scmp.ne.s32.totalorder %s2485_s24, 0 }
  0x24   : > { %2235 = vmatpush.bf16.msra.mxu1 %v2166_v17  ;;  %2236 = vmatpush.bf16.msra.mxu2 %v2166_v17 }
  0x25   : > { %2237 = vmatpush.bf16.msra.mxu3 %v2166_v17 }
  0x27   : > { %s2639_s20 = scalar_lea.vmem %s3353_s0, %s1878_s16  ;;  %715 = vmatpush.bf16.msra.mxu0 %v2165_v19 }
  0x28   : > { %v296_v3 = vld [vmem:[%s2639_s20] sm:$0xff]  ;;  %v297_v4 = vld [vmem:[%s2639_s20 + $0x8] sm:$0xff]  ;;  %v298_v5 = vld [vmem:[%s2639_s20 + $0x10] sm:$0xff]  ;;  %2238 = vmatpush.bf16.msra.mxu1 %v2165_v19  ;;  %2239 = vmatpush.bf16.msra.mxu2 %v2165_v19 }
  0x29   : > { %411 = vperm.xlu1 %2333, %v296_v3   ;;  %315 = vperm.xlu0 %2332, %v296_v3   ;;  %v299_v6 = vld [vmem:[%s2639_s20 + $0x18] sm:$0xff]  ;;  %v300_v7 = vld [vmem:[%s2639_s20 + $0x20] sm:$0xff]  ;;  %v301_v8 = vld [vmem:[%s2639_s20 + $0x28] sm:$0xff] }
  0x2a   : > { %508 = vperm.xlu2 %2334, %v296_v3   ;;  %v302_v9 = vld [vmem:[%s2639_s20 + $0x30] sm:$0xff]  ;;  %v303_v10 = vld [vmem:[%s2639_s20 + $0x38] sm:$0xff]  ;;  %v305_v11 = vld [vmem:[%s2639_s20 + $0x48] sm:$0xff]  ;;  %2240 = vmatpush.bf16.msra.mxu3 %v2165_v19 }
  0x2b   : > { %v306_v12 = vld [vmem:[%s2639_s20 + $0x50] sm:$0xff]  ;;  %v304_v13 = vld [vmem:[%s2639_s20 + $0x40] sm:$0xff]  ;;  %v307_v14 = vld [vmem:[%s2639_s20 + $0x58] sm:$0xff]  ;;  %716 = vmatpush.bf16.msra.mxu0 %v2164_v21 }
  0x2c   : > { %v2674_v15 = vld [vmem:[%s2639_s20 + $0x60] sm:$0xff]  ;;  %v309_v18 = vld [vmem:[%s2639_s20 + $0x68] sm:$0xff]  ;;  %v2684_v22 = vld [vmem:[%s2639_s20 + $0x70] sm:$0xff]  ;;  %2241 = vmatpush.bf16.msra.mxu1 %v2164_v21  ;;  %2242 = vmatpush.bf16.msra.mxu2 %v2164_v21 }
  0x2d   : > { %v311_v52 = vld [vmem:[%s2639_s20 + $0x78] sm:$0xff] }
  0x2e   : > { %2243 = vmatpush.bf16.msra.mxu3 %v2164_v21 }
  0x31   : > { %415 = vperm.xlu1 %2333, %v297_v4   ;;  %320 = vperm.xlu0 %2332, %v297_v4  }
  0x32   : > { %512 = vperm.xlu2 %2334, %v297_v4  }
  0x39   : > { %2335 = vset.pattern.permute.xlu1 %v2507_v1  ;;  %325 = vperm.xlu0 %2332, %v298_v5  }
  0x3a   : > { %330 = vperm.xlu1 %2335, %v299_v6   ;;  %2336 = vset.pattern.permute.xlu2 %v2506_v0 }
  0x3b   : > { %419 = vperm.xlu2 %2336, %v298_v5  }
  0x41   : > { %2337 = vset.pattern.permute.xlu0 %v2506_v0 }
  0x42   : > { %2338 = vset.pattern.permute.xlu1 %v2508_v2  ;;  %423 = vperm.xlu0 %2337, %v299_v6  }
  0x43   : > { %516 = vperm.xlu1 %2338, %v298_v5   ;;  %2339 = vset.pattern.permute.xlu2 %v2508_v2 }
  0x44   : > { %520 = vperm.xlu2 %2339, %v299_v6  }
  0x4a   : > { %427 = vperm.xlu0 %2337, %v300_v7  }
  0x4b   : > { %2340 = vset.pattern.permute.xlu1 %v2507_v1 }
  0x4c   : > { %335 = vperm.xlu1 %2340, %v300_v7   ;;  %2341 = vset.pattern.permute.xlu2 %v2507_v1 }
  0x4d   : > { %340 = vperm.xlu2 %2341, %v301_v8  }
  0x52   : > { %2344 = vset.pattern.permute.xlu0 %v2508_v2 }
  0x53   : > { %528 = vperm.xlu0 %2344, %v301_v8  }
  0x54   : > { %2342 = vset.pattern.permute.xlu1 %v2506_v0 }
  0x55   : > { %431 = vperm.xlu1 %2342, %v301_v8   ;;  %2343 = vset.pattern.permute.xlu2 %v2508_v2 }
  0x56   : > { %524 = vperm.xlu2 %2343, %v300_v7  }
  0x5b   : > { %532 = vperm.xlu0 %2344, %v302_v9  }
  0x5d   : > { %2345 = vset.pattern.permute.xlu1 %v2507_v1 }
  0x5e   : > { %345 = vperm.xlu1 %2345, %v302_v9   ;;  %2346 = vset.pattern.permute.xlu2 %v2507_v1 }
  0x5f   : > { %350 = vperm.xlu2 %2346, %v303_v10  }
  0x63   : > { %2351 = vset.pattern.permute.xlu0 %v2507_v1 }
  0x64   : > { %360 = vperm.xlu0 %2351, %v305_v11  }
  0x66   : > { %2347 = vset.pattern.permute.xlu1 %v2506_v0 }
  0x67   : > { %435 = vperm.xlu1 %2347, %v302_v9   ;;  %2348 = vset.pattern.permute.xlu2 %v2506_v0 }
  0x68   : > { %439 = vperm.xlu2 %2348, %v303_v10  }
  0x6c   : > { %365 = vperm.xlu0 %2351, %v306_v12  }
  0x6f   : > { %2349 = vset.pattern.permute.xlu1 %v2508_v2 }
  0x70   : > { %536 = vperm.xlu1 %2349, %v303_v10   ;;  %2350 = vset.pattern.permute.xlu2 %v2507_v1 }
  0x71   : > { %355 = vperm.xlu2 %2350, %v304_v13  }
  0x74   : > { %2358 = vset.pattern.permute.xlu0 %v2506_v0 }
  0x75   : > { %455 = vperm.xlu0 %2358, %v307_v14  }
  0x78   : > { %2352 = vset.pattern.permute.xlu1 %v2506_v0 }
  0x79   : > { %443 = vperm.xlu1 %2352, %v304_v13   ;;  %2353 = vset.pattern.permute.xlu2 %v2506_v0 }
  0x7a   : > { %447 = vperm.xlu2 %2353, %v305_v11  }
  0x7d   : > { %459 = vperm.xlu0 %2358, %v2674_v15  }
  0x81   : > { %2354 = vset.pattern.permute.xlu1 %v2508_v2 }
  0x82   : > { %540 = vperm.xlu1 %2354, %v304_v13   ;;  %2355 = vset.pattern.permute.xlu2 %v2508_v2 }
  0x83   : > { %544 = vperm.xlu2 %2355, %v305_v11  }
  0x84   : > { %v509_v20 = vpop.permute.xlu2 %508 }
  0x85   : > { %2365 = vset.pattern.permute.xlu0 %v2508_v2  ;;  %v572_v33 = vmul.f32 %v2696_v29, %v509_v20 }
  0x86   : > { %560 = vperm.xlu0 %2365, %v309_v18  }
  0x8a   : > { %2356 = vset.pattern.permute.xlu1 %v2507_v1 }
  0x8b   : > { %370 = vperm.xlu1 %2356, %v307_v14   ;;  %2357 = vset.pattern.permute.xlu2 %v2506_v0 }
  0x8c   : > { %451 = vperm.xlu2 %2357, %v306_v12   ;;  %v513_v23 = vpop.permute.xlu2 %512 }
  0x8d   : > { %v573_v41 = vmul.f32 %v2696_v29, %v513_v23 }
  0x8e   : > { %564 = vperm.xlu0 %2365, %v2684_v22  }
  0x93   : > { %2359 = vset.pattern.permute.xlu1 %v2508_v2 }
  0x94   : > { %548 = vperm.xlu1 %2359, %v306_v12   ;;  %2360 = vset.pattern.permute.xlu2 %v2508_v2 }
  0x95   : > { %552 = vperm.xlu2 %2360, %v307_v14   ;;  %v420_v32 = vpop.permute.xlu2 %419 }
  0x96   : > { %v477_v53 = vmul.f32 %v2692_v25, %v420_v32 }
  0x9b   : > { %v412_v27 = vpop.permute.xlu1 %411  ;;  %v316_v28 = vpop.permute.xlu0 %315 }
  0x9c   : > { %v475_v30 = vmul.f32 %v2692_v25, %v412_v27  ;;  %v394_v31 = vmul.f32 %v2694_v26, %v316_v28  ;;  %2361 = vset.pattern.permute.xlu1 %v2507_v1 }
  0x9d   : > { %375 = vperm.xlu1 %2361, %v2674_v15   ;;  %2362 = vset.pattern.permute.xlu2 %v2507_v1 }
  0x9e   : > { %380 = vperm.xlu2 %2362, %v309_v18   ;;  %v491_v34 = vadd.f32 %v475_v30, %v394_v31  ;;  %v521_v43 = vpop.permute.xlu2 %520 }
  0x9f   : > { %v575_v59 = vmul.f32 %v2696_v29, %v521_v43 }
  0xa0   : > { %v588_v37 = vadd.f32 %v572_v33, %v491_v34 }
  0xa2   : > { %v608_v45 = vadd.f32 %v2709_v40, %v588_v37 }
  0xa3   : > { %v416_v35 = vpop.permute.xlu1 %415  ;;  %v321_v36 = vpop.permute.xlu0 %320 }
  0xa4   : > { %v476_v38 = vmul.f32 %v2692_v25, %v416_v35  ;;  %v395_v39 = vmul.f32 %v2694_v26, %v321_v36  ;;  %v624_v49 = vmax.f32 %v608_v45, 0.0 }
  0xa5   : > { %2363 = vset.pattern.permute.xlu1 %v2506_v0 }
  0xa6   : > { %v492_v42 = vadd.f32 %v476_v38, %v395_v39  ;;  %463 = vperm.xlu1 %2363, %v309_v18   ;;  %2364 = vset.pattern.permute.xlu2 %v2508_v2 }
  0xa7   : > { %556 = vperm.xlu2 %2364, %v2674_v15   ;;  %v341_v55 = vpop.permute.xlu2 %340 }
  0xa8   : > { %v589_v44 = vadd.f32 %v573_v41, %v492_v42  ;;  %v399_v18 = vmul.f32 %v2694_v26, %v341_v55 }
  0xaa   : > { %v609_v46 = vadd.f32 %v2709_v40, %v589_v44 }
  0xab   : > { %v326_v47 = vpop.permute.xlu0 %325 }
  0xac   : > { %v331_v48 = vpop.permute.xlu1 %330  ;;  %v625_v50 = vmax.f32 %v609_v46, 0.0  ;;  %v396_v54 = vmul.f32 %v2694_v26, %v326_v47 }
  0xad   : > { %v397_v58 = vmul.f32 %v2694_v26, %v331_v48 }
  0xae   : > { %2366 = vset.pattern.permute.xlu1 %v2507_v1  ;;  %v640_v51 = vpack.c.bf16 %v625_v50, %v624_v49  ;;  %v493_v56 = vadd.f32 %v477_v53, %v396_v54 }
  0xaf   : > { %385 = vperm.xlu1 %2366, %v2684_v22   ;;  %2367 = vset.pattern.permute.xlu2 %v2507_v1 }
  0xb0   : > { %1895 = vmatmul.msk.bf16.vlgmr.msra.gmra.mxu0 %vm684_vm0, %v640_v51  ;;  %390 = vperm.xlu2 %2367, %v311_v52   ;;  %v525_v5 = vpop.permute.xlu2 %524 }
  0xb1   : > { %v576_v15 = vmul.f32 %v2696_v29, %v525_v5 }
  0xb4   : > { %v424_v57 = vpop.permute.xlu0 %423 }
  0xb5   : > { %v478_v60 = vmul.f32 %v2692_v25, %v424_v57  ;;  %v517_v61 = vpop.permute.xlu1 %516 }
  0xb6   : > { %v574_v62 = vmul.f32 %v2696_v29, %v517_v61 }
  0xb7   : > { %v494_v63 = vadd.f32 %v478_v60, %v397_v58  ;;  %2368 = vset.pattern.permute.xlu1 %v2506_v0 }
  0xb8   : > { %v590_v1 = vadd.f32 %v574_v62, %v493_v56  ;;  %467 = vperm.xlu1 %2368, %v2684_v22   ;;  %2369 = vset.pattern.permute.xlu2 %v2506_v0 }
  0xb9   : > { %v591_v3 = vadd.f32 %v575_v59, %v494_v63  ;;  %471 = vperm.xlu2 %2369, %v311_v52   ;;  %v351_v0 = vpop.permute.xlu2 %350 }
  0xba   : > { %v610_v4 = vadd.f32 %v2709_v40, %v590_v1  ;;  %v401_v41 = vmul.f32 %v2694_v26, %v351_v0  ;;  %v2224_v0 = vld [vmem:[%s3346_s5 + $0x1c4] sm:$0xf] }
  0xbb   : > { %v611_v6 = vadd.f32 %v2709_v40, %v591_v3 }
  0xbc   : > { %v626_v7 = vmax.f32 %v610_v4, 0.0  ;;  %v428_v8 = vpop.permute.xlu0 %427 }
  0xbd   : > { %v627_v9 = vmax.f32 %v611_v6, 0.0  ;;  %v479_v13 = vmul.f32 %v2692_v25, %v428_v8 }
  0xbe   : > { %v336_v10 = vpop.permute.xlu1 %335 }
  0xbf   : > { %v641_v11 = vpack.c.bf16 %v627_v9, %v626_v7  ;;  %v398_v12 = vmul.f32 %v2694_v26, %v336_v10 }
  0xc0   : > { %2370 = vset.pattern.permute.xlu1 %v2508_v2 }
  0xc1   : > { %568 = vperm.xlu1 %2370, %v311_v52   ;;  %1896 = vmatmul.msk.bf16.gmra.mxu0 %vm684_vm0, %v641_v11  ;;  %v495_v14 = vadd.f32 %v479_v13, %v398_v12  ;;  %v2129_v12 = vld [vmem:[%s3346_s5 + $0x1c0] sm:$0xf] }
  0xc2   : > { %v440_v24 = vpop.permute.xlu2 %439  ;;  %v2228_v13 = vld [vmem:[%s3346_s5 + $0x1dc] sm:$0xf0] }
  0xc3   : > { %v592_v19 = vadd.f32 %v576_v15, %v495_v14  ;;  %v482_v42 = vmul.f32 %v2692_v25, %v440_v24  ;;  %v2130_v15 = vor.u32 %v2228_v13, %v2129_v12  ;;  %v2011_v12 = vld [vmem:[%s3346_s5 + $0xe8] sm:$0xf0] }
  0xc5   : > { %v529_v16 = vpop.permute.xlu0 %528  ;;  %v612_v23 = vadd.f32 %v2709_v40, %v592_v19  ;;  %v498_v46 = vadd.f32 %v482_v42, %v401_v41  ;;  %v2139_v19 = vld [vmem:[%s3346_s5 + $0x1e8] sm:$0xf0]  ;;  %1166 = vmatpush.bf16.msrb.mxu1 %v2130_v15  ;;  %v2212_v41 = vld [vmem:[%s3346_s5 + $0x15c] sm:$0xf0]  ;;  %v2208_v42 = vld [vmem:[%s3346_s5 + $0x144] sm:$0xf] }
  0xc6   : > { %v577_v21 = vmul.f32 %v2696_v29, %v529_v16  ;;  %v2131_v16 = vld [vmem:[%s3346_s5 + $0x1e0] sm:$0xf0]  ;;  %v2229_v15 = vld [vmem:[%s3346_s5 + $0x1e4] sm:$0xf0] }
  0xc7   : > { %v432_v17 = vpop.permute.xlu1 %431  ;;  %v628_v28 = vmax.f32 %v612_v23, 0.0 }
  0xc8   : > { %v480_v20 = vmul.f32 %v2692_v25, %v432_v17  ;;  %v2225_v17 = vld [vmem:[%s3346_s5 + $0x1cc] sm:$0xf] }
  0xc9   : > { %v2142_v23 = vor.u32 %v2225_v17, %v2139_v19 }
  0xca   : > { %v496_v22 = vadd.f32 %v480_v20, %v399_v18  ;;  %v2134_v18 = vor.u32 %v2224_v0, %v2131_v16 }
  0xcb   : > { %v356_v33 = vpop.permute.xlu2 %355  ;;  %1313 = vmatpush.bf16.msrb.mxu0 %v2142_v23 }
  0xcc   : > { %v593_v2 = vadd.f32 %v577_v21, %v496_v22  ;;  %v402_v1 = vmul.f32 %v2694_v26, %v356_v33  ;;  %1215 = vmatpush.bf16.msrb.mxu2 %v2134_v18  ;;  %v2217_v33 = vld [vmem:[%s3346_s5 + $0x18c] sm:$0xf] }
  0xcd   : > { %v533_v36 = vpop.permute.xlu0 %532 }
  0xce   : > { %v613_v27 = vadd.f32 %v2709_v40, %v593_v2  ;;  %v578_v39 = vmul.f32 %v2696_v29, %v533_v36 }
  0xd0   : > { %v629_v30 = vmax.f32 %v613_v27, 0.0  ;;  %v346_v31 = vpop.permute.xlu1 %345  ;;  %v2097_v27 = vld [vmem:[%s3346_s5 + $0x180] sm:$0xf] }
  0xd1   : > { %v400_v37 = vmul.f32 %v2694_v26, %v346_v31 }
  0xd2   : > { %v642_v32 = vpack.c.bf16 %v629_v30, %v628_v28  ;;  %v2220_v28 = vld [vmem:[%s3346_s5 + $0x19c] sm:$0xf0]  ;;  %v2216_v30 = vld [vmem:[%s3346_s5 + $0x184] sm:$0xf] }
  0xd3   : > { %v2098_v31 = vor.u32 %v2220_v28, %v2097_v27  ;;  %v1971_v27 = vld [vmem:[%s3346_s5 + $0xa0] sm:$0xf0]  ;;  %v2185_v28 = vld [vmem:[%s3346_s5 + $0x8c] sm:$0xf] }
  0xd4   : > { %1897 = vmatmul.msk.bf16.vlgmr.msra.gmra.mxu1 %vm684_vm0, %v642_v32  ;;  %v448_v43 = vpop.permute.xlu2 %447  ;;  %v2099_v32 = vld [vmem:[%s3346_s5 + $0x1a0] sm:$0xf0] }
  0xd5   : > { %v484_v54 = vmul.f32 %v2692_v25, %v448_v43  ;;  %1167 = vmatpush.bf16.msrb.mxu1 %v2098_v31 }
  0xd6   : > { %v361_v50 = vpop.permute.xlu0 %360 }
  0xd7   : > { %v403_v55 = vmul.f32 %v2694_v26, %v361_v50 }
  0xd9   : > { %v436_v34 = vpop.permute.xlu1 %435  ;;  %v500_v59 = vadd.f32 %v484_v54, %v403_v55  ;;  %v2200_v54 = vld [vmem:[%s3346_s5 + $0x104] sm:$0xf] }
  0xda   : > { %v481_v35 = vmul.f32 %v2692_v25, %v436_v34  ;;  %v2107_v34 = vld [vmem:[%s3346_s5 + $0x1a8] sm:$0xf0] }
  0xdb   : > { %v2110_v36 = vor.u32 %v2217_v33, %v2107_v34  ;;  %v2105_v33 = vld [vmem:[%s3346_s5 + $0x188] sm:$0xf] }
  0xdc   : > { %v497_v38 = vadd.f32 %v481_v35, %v400_v37  ;;  %v2102_v35 = vor.u32 %v2216_v30, %v2099_v32  ;;  %v1979_v30 = vld [vmem:[%s3346_s5 + $0xa8] sm:$0xf0]  ;;  %v2221_v34 = vld [vmem:[%s3346_s5 + $0x1a4] sm:$0xf0] }
  0xdd   : > { %v545_v56 = vpop.permute.xlu2 %544  ;;  %1314 = vmatpush.bf16.msrb.mxu0 %v2110_v36  ;;  %v1982_v32 = vor.u32 %v2185_v28, %v1979_v30  ;;  %v1913_v28 = vld [vmem:[%s3346_s5 + $0x8] sm:$0xf] }
  0xde   : > { %v594_v44 = vadd.f32 %v578_v39, %v497_v38  ;;  %v581_v60 = vmul.f32 %v2696_v29, %v545_v56  ;;  %v366_v61 = vpop.permute.xlu0 %365  ;;  %1216 = vmatpush.bf16.msrb.mxu2 %v2102_v35  ;;  %v2065_v39 = vld [vmem:[%s3346_s5 + $0x140] sm:$0xf]  ;;  %v2173_v30 = vld [vmem:[%s3346_s5 + $0x24] sm:$0xf0] }
  0xdf   : > { %v404_v43 = vmul.f32 %v2694_v26, %v366_v61 }
  0xe0   : > { %v614_v48 = vadd.f32 %v2709_v40, %v594_v44  ;;  %v597_v63 = vadd.f32 %v581_v60, %v500_v59 }
  0xe2   : > { %v537_v45 = vpop.permute.xlu1 %536  ;;  %v630_v52 = vmax.f32 %v614_v48, 0.0  ;;  %v617_v6 = vadd.f32 %v2709_v40, %v597_v63  ;;  %v2075_v48 = vld [vmem:[%s3346_s5 + $0x168] sm:$0xf0] }
  0xe3   : > { %v579_v47 = vmul.f32 %v2696_v29, %v537_v45  ;;  %v2066_v45 = vor.u32 %v2212_v41, %v2065_v39  ;;  %v1937_v39 = vld [vmem:[%s3346_s5 + $0x40] sm:$0xf] }
  0xe4   : > { %v633_v9 = vmax.f32 %v617_v6, 0.0  ;;  %v2196_v6 = vld [vmem:[%s3346_s5 + $0xdc] sm:$0xf0] }
  0xe5   : > { %v595_v49 = vadd.f32 %v579_v47, %v498_v46  ;;  %v2067_v46 = vld [vmem:[%s3346_s5 + $0x160] sm:$0xf0]  ;;  %v2209_v47 = vld [vmem:[%s3346_s5 + $0x14c] sm:$0xf]  ;;  %1168 = vmatpush.bf16.msrb.mxu1 %v2066_v45  ;;  %v2180_v41 = vld [vmem:[%s3346_s5 + $0x5c] sm:$0xf0] }
  0xe6   : > { %v452_v4 = vpop.permute.xlu2 %451  ;;  %v2078_v50 = vor.u32 %v2209_v47, %v2075_v48  ;;  %v2177_v45 = vld [vmem:[%s3346_s5 + $0x4c] sm:$0xf] }
  0xe7   : > { %v615_v51 = vadd.f32 %v2709_v40, %v595_v49  ;;  %v456_v11 = vpop.permute.xlu0 %455  ;;  %v485_v44 = vmul.f32 %v2692_v25, %v452_v4  ;;  %v2070_v49 = vor.u32 %v2208_v42, %v2067_v46  ;;  %v2176_v42 = vld [vmem:[%s3346_s5 + $0x44] sm:$0xf]  ;;  %v1947_v46 = vld [vmem:[%s3346_s5 + $0x68] sm:$0xf0] }
  0xe8   : > { %v486_v21 = vmul.f32 %v2692_v25, %v456_v11  ;;  %1315 = vmatpush.bf16.msrb.mxu0 %v2078_v50  ;;  %v2193_v11 = vld [vmem:[%s3346_s5 + $0xcc] sm:$0xf]  ;;  %v1950_v48 = vor.u32 %v2177_v45, %v1947_v46  ;;  %v2213_v50 = vld [vmem:[%s3346_s5 + $0x164] sm:$0xf0] }
  0xe9   : > { %v631_v53 = vmax.f32 %v615_v51, 0.0  ;;  %1217 = vmatpush.bf16.msrb.mxu2 %v2070_v49  ;;  %v501_v59 = vadd.f32 %v485_v44, %v404_v43  ;;  %v2014_v0 = vor.u32 %v2193_v11, %v2011_v12  ;;  %v1938_v43 = vor.u32 %v2180_v41, %v1937_v39  ;;  %v1939_v44 = vld [vmem:[%s3346_s5 + $0x60] sm:$0xf0]  ;;  %v2073_v49 = vld [vmem:[%s3346_s5 + $0x148] sm:$0xf] }
  0xea   : > { %v1942_v47 = vor.u32 %v2176_v42, %v1939_v44 }
  0xeb   : > { %v444_v57 = vpop.permute.xlu1 %443  ;;  %v643_v58 = vpack.c.bf16 %v631_v53, %v630_v52  ;;  %v2033_v52 = vld [vmem:[%s3346_s5 + $0x100] sm:$0xf] }
  0xec   : > { %v483_v62 = vmul.f32 %v2692_v25, %v444_v57  ;;  %v2204_v53 = vld [vmem:[%s3346_s5 + $0x11c] sm:$0xf0]  ;;  %v2035_v57 = vld [vmem:[%s3346_s5 + $0x120] sm:$0xf0] }
  0xed   : > { %1898 = vmatmul.msk.bf16.gmra.mxu1 %vm684_vm0, %v643_v58  ;;  %v2034_v56 = vor.u32 %v2204_v53, %v2033_v52  ;;  %v2201_v58 = vld [vmem:[%s3346_s5 + $0x10c] sm:$0xf]  ;;  %v2038_v61 = vor.u32 %v2200_v54, %v2035_v57  ;;  %v2074_v53 = vor.u32 %v2213_v50, %v2073_v49  ;;  %v2168_v57 = vld [vmem:[%s3346_s5 + $0x4] sm:$0xf] }
  0xee   : > { %v499_v5 = vadd.f32 %v483_v62, %v402_v1  ;;  %v2043_v62 = vld [vmem:[%s3346_s5 + $0x128] sm:$0xf0] }
  0xef   : > { %v553_v24 = vpop.permute.xlu2 %552  ;;  %v2046_v1 = vor.u32 %v2201_v58, %v2043_v62  ;;  %1169 = vmatpush.bf16.msrb.mxu1 %v2034_v56  ;;  %1218 = vmatpush.bf16.msrb.mxu2 %v2038_v61  ;;  %v460_v19 = vpop.permute.xlu0 %459  ;;  %v2172_v56 = vld [vmem:[%s3346_s5 + $0x1c] sm:$0xf0]  ;;  %v1915_v61 = vld [vmem:[%s3346_s5 + $0x28] sm:$0xf0] }
  0xf0   : > { %v583_v38 = vmul.f32 %v2696_v29, %v553_v24  ;;  %v487_v36 = vmul.f32 %v2692_v25, %v460_v19  ;;  %v1977_v19 = vld [vmem:[%s3346_s5 + $0x88] sm:$0xf] }
  0xf1   : > { %1316 = vmatpush.bf16.msrb.mxu0 %v2046_v1 }
  0xf4   : > { %v541_v3 = vpop.permute.xlu1 %540 }
  0xf5   : > { %v580_v7 = vmul.f32 %v2696_v29, %v541_v3  ;;  %1317 = vmatpush.bf16.msrb.mxu0 %v2014_v0  ;;  %v2197_v0 = vld [vmem:[%s3346_s5 + $0xe4] sm:$0xf0] }
  0xf7   : > { %v596_v8 = vadd.f32 %v580_v7, %v499_v5  ;;  %v2001_v5 = vld [vmem:[%s3346_s5 + $0xc0] sm:$0xf]  ;;  %v2192_v7 = vld [vmem:[%s3346_s5 + $0xc4] sm:$0xf] }
  0xf8   : > { %v2840_v63 = vpop.permute.xlu2 %380  ;;  %v561_v54 = vpop.permute.xlu0 %560 }
  0xf9   : > { %v616_v10 = vadd.f32 %v2709_v40, %v596_v8  ;;  %1318 = vmatpush.bf16.msrb.mxu0 %v1982_v32  ;;  %v407_v62 = vmul.f32 %v2694_v26, %v2840_v63  ;;  %v1914_v32 = vor.u32 %v2173_v30, %v1913_v28 }
  0xfb   : > { %v632_v14 = vmax.f32 %v616_v10, 0.0  ;;  %v2003_v10 = vld [vmem:[%s3346_s5 + $0xe0] sm:$0xf0] }
  0xfc   : > { %v2006_v13 = vor.u32 %v2192_v7, %v2003_v10 }
  0xfd   : > { %v371_v20 = vpop.permute.xlu1 %370  ;;  %v644_v22 = vpack.c.bf16 %v633_v9, %v632_v14  ;;  %v2002_v9 = vor.u32 %v2196_v6, %v2001_v5  ;;  %v2137_v14 = vld [vmem:[%s3346_s5 + $0x1c8] sm:$0xf]  ;;  %1319 = vmatpush.bf16.msrb.mxu0 %v1950_v48 }
  0xfe   : > { %v405_v2 = vmul.f32 %v2694_v26, %v371_v20  ;;  %v2138_v18 = vor.u32 %v2229_v15, %v2137_v14  ;;  %1219 = vmatpush.bf16.msrb.mxu2 %v2006_v13  ;;  %v1969_v20 = vld [vmem:[%s3346_s5 + $0x80] sm:$0xf]  ;;  %v2041_v5 = vld [vmem:[%s3346_s5 + $0x108] sm:$0xf] }
  0xff   : > { %1899 = vmatmul.msk.bf16.vlgmr.msra.gmra.mxu2 %vm684_vm0, %v644_v22  ;;  %1170 = vmatpush.bf16.msrb.mxu1 %v2002_v9  ;;  %v2184_v22 = vld [vmem:[%s3346_s5 + $0x84] sm:$0xf]  ;;  %v2205_v6 = vld [vmem:[%s3346_s5 + $0x124] sm:$0xf0]  ;;  %v585_v9 = vmul.f32 %v2696_v29, %v561_v54 }
 0x100   : > { %v502_v37 = vadd.f32 %v486_v21, %v405_v2  ;;  %v2188_v21 = vld [vmem:[%s3346_s5 + $0x9c] sm:$0xf0]  ;;  %1264 = vmatpush.bf16.msrb.mxu3 %v2138_v18  ;;  %v1974_v31 = vor.u32 %v2184_v22, %v1971_v27  ;;  %v2042_v10 = vor.u32 %v2205_v6, %v2041_v5  ;;  %v2009_v13 = vld [vmem:[%s3346_s5 + $0xc8] sm:$0xf]  ;;  %v2155_v5 = vld [vmem:[%s3346_s5 + $0x1f8] sm:$0xf0] }
 0x101   : > { %v1970_v24 = vor.u32 %v2188_v21, %v1969_v20  ;;  %v2010_v14 = vor.u32 %v2197_v0, %v2009_v13  ;;  %v2189_v20 = vld [vmem:[%s3346_s5 + $0xa4] sm:$0xf0]  ;;  %v2218_v13 = vld [vmem:[%s3346_s5 + $0x194] sm:$0xf] }
 0x102   : > { %v599_v51 = vadd.f32 %v583_v38, %v502_v37  ;;  %v2106_v37 = vor.u32 %v2221_v34, %v2105_v33  ;;  %v557_v38 = vpop.permute.xlu2 %556  ;;  %1220 = vmatpush.bf16.msrb.mxu2 %v1974_v31  ;;  %v1978_v21 = vor.u32 %v2189_v20, %v1977_v19  ;;  %v2115_v0 = vld [vmem:[%s3346_s5 + $0x1b0] sm:$0xf0]  ;;  %v2113_v19 = vld [vmem:[%s3346_s5 + $0x190] sm:$0xf] }
 0x103   : > { %1171 = vmatpush.bf16.msrb.mxu1 %v1970_v24  ;;  %v584_v52 = vmul.f32 %v2696_v29, %v557_v38  ;;  %v2181_v24 = vld [vmem:[%s3346_s5 + $0x64] sm:$0xf0]  ;;  %v2222_v20 = vld [vmem:[%s3346_s5 + $0x1ac] sm:$0xf0] }
 0x104   : > { %v619_v3 = vadd.f32 %v2709_v40, %v599_v51  ;;  %1265 = vmatpush.bf16.msrb.mxu3 %v2106_v37 }
 0x106   : > { %v549_v55 = vpop.permute.xlu1 %548  ;;  %v635_v16 = vmax.f32 %v619_v3, 0.0  ;;  %1221 = vmatpush.bf16.msrb.mxu2 %v1942_v47 }
 0x107   : > { %v582_v60 = vmul.f32 %v2696_v29, %v549_v55  ;;  %1172 = vmatpush.bf16.msrb.mxu1 %v1938_v43  ;;  %v1905_v55 = vld [vmem:[%s3346_s5] sm:$0xf] }
 0x108   : > { %1266 = vmatpush.bf16.msrb.mxu3 %v2074_v53  ;;  %v1906_v58 = vor.u32 %v2172_v56, %v1905_v55  ;;  %v2983_v43 = vld [vmem:[%s3345_s4] ss:$0 sm:$0xff] }
 0x109   : > { %v598_v4 = vadd.f32 %v582_v60, %v501_v59  ;;  %v1907_v59 = vld [vmem:[%s3346_s5 + $0x20] sm:$0xf0]  ;;  %v2169_v60 = vld [vmem:[%s3346_s5 + $0xc] sm:$0xf] }
 0x10a   : > { %v1910_v3 = vor.u32 %v2168_v57, %v1907_v59  ;;  %v391_v22 = vpop.permute.xlu2 %390 }
 0x10b   : > { %v618_v8 = vadd.f32 %v2709_v40, %v598_v4  ;;  %v1918_v4 = vor.u32 %v2169_v60, %v1915_v61  ;;  %1173 = vmatpush.bf16.msrb.mxu1 %v1906_v58  ;;  %v409_v39 = vmul.f32 %v2694_v26, %v391_v22  ;;  %v2226_v58 = vld [vmem:[%s3346_s5 + $0x1d4] sm:$0xf]  ;;  %v2153_v60 = vld [vmem:[%s3346_s5 + $0x1d8] sm:$0xf] }
 0x10c   : > { %1222 = vmatpush.bf16.msrb.mxu2 %v1910_v3  ;;  %1267 = vmatpush.bf16.msrb.mxu3 %v2042_v10  ;;  %v2231_v61 = vld [vmem:[%s3346_s5 + $0x1f4] sm:$0xf0]  ;;  %v2230_v3 = vld [vmem:[%s3346_s5 + $0x1ec] sm:$0xf0] }
 0x10d   : > { %v634_v17 = vmax.f32 %v618_v8, 0.0  ;;  %1320 = vmatpush.bf16.msrb.mxu0 %v1918_v4  ;;  %v2227_v4 = vld [vmem:[%s3346_s5 + $0x1dc] sm:$0xf] }
 0x10f   : > { %v376_v23 = vpop.permute.xlu1 %375  ;;  %v645_v2 = vpack.c.bf16 %v635_v16, %v634_v17 }
 0x110   : > { %v406_v35 = vmul.f32 %v2694_v26, %v376_v23  ;;  %1268 = vmatpush.bf16.msrb.mxu3 %v2010_v14  ;;  %v2121_v14 = vld [vmem:[%s3346_s5 + $0x198] sm:$0xf] }
 0x111   : > { %1900 = vmatmul.msk.bf16.gmra.mxu2 %vm684_vm0, %v645_v2  ;;  %v1945_v2 = vld [vmem:[%s3346_s5 + $0x48] sm:$0xf] }
 0x112   : > { %v503_v51 = vadd.f32 %v487_v36, %v406_v35  ;;  %v1946_v27 = vor.u32 %v2181_v24, %v1945_v2  ;;  %v565_v35 = vpop.permute.xlu0 %564  ;;  %v2123_v2 = vld [vmem:[%s3346_s5 + $0x1b8] sm:$0xf0] }
 0x113   : > { %v472_v36 = vpop.permute.xlu2 %471  ;;  %v586_v41 = vmul.f32 %v2696_v29, %v565_v35  ;;  %v2089_v35 = vld [vmem:[%s3346_s5 + $0x158] sm:$0xf] }
 0x114   : > { %v600_v7 = vadd.f32 %v584_v52, %v503_v51  ;;  %1269 = vmatpush.bf16.msrb.mxu3 %v1978_v21  ;;  %v490_v42 = vmul.f32 %v2692_v25, %v472_v36  ;;  %v2219_v21 = vld [vmem:[%s3346_s5 + $0x19c] sm:$0xf] }
 0x116   : > { %v620_v11 = vadd.f32 %v2709_v40, %v600_v7  ;;  %v506_v46 = vadd.f32 %v490_v42, %v409_v39  ;;  %v2158_v7 = vor.u32 %v2227_v4, %v2155_v5  ;;  %v2081_v39 = vld [vmem:[%s3346_s5 + $0x150] sm:$0xf]  ;;  %v2211_v42 = vld [vmem:[%s3346_s5 + $0x15c] sm:$0xf]  ;;  %v2025_v4 = vld [vmem:[%s3346_s5 + $0xd8] sm:$0xf] }
 0x118   : > { %v464_v1 = vpop.permute.xlu1 %463  ;;  %v636_v16 = vmax.f32 %v620_v11, 0.0  ;;  %1270 = vmatpush.bf16.msrb.mxu3 %v1946_v27  ;;  %1509 = vmatpush.bf16.msra.mxu0 %v2158_v7  ;;  %v2126_v27 = vor.u32 %v2219_v21, %v2123_v2  ;;  %v2199_v7 = vld [vmem:[%s3346_s5 + $0xf4] sm:$0xf0]  ;;  %v2186_v21 = vld [vmem:[%s3346_s5 + $0x94] sm:$0xf] }
 0x119   : > { %v488_v8 = vmul.f32 %v2692_v25, %v464_v1  ;;  %v2154_v1 = vor.u32 %v2231_v61, %v2153_v60  ;;  %v2059_v61 = vld [vmem:[%s3346_s5 + $0x138] sm:$0xf0] }
 0x11b   : > { %v504_v63 = vadd.f32 %v488_v8, %v407_v62  ;;  %v2145_v62 = vld [vmem:[%s3346_s5 + $0x1d0] sm:$0xf] }
 0x11c   : > { %1271 = vmatpush.bf16.msrb.mxu3 %v1914_v32  ;;  %v2146_v6 = vor.u32 %v2230_v3, %v2145_v62  ;;  %1510 = vmatpush.bf16.msra.mxu0 %v2126_v27  ;;  %v2019_v3 = vld [vmem:[%s3346_s5 + $0xf0] sm:$0xf0]  ;;  %v1985_v27 = vld [vmem:[%s3346_s5 + $0x90] sm:$0xf] }
 0x11d   : > { %v601_v12 = vadd.f32 %v585_v9, %v504_v63 }
 0x11e   : > { %1362 = vmatpush.bf16.msra.mxu1 %v2146_v6 }
 0x11f   : > { %v621_v15 = vadd.f32 %v2709_v40, %v601_v12 }
 0x121   : > { %v637_v17 = vmax.f32 %v621_v15, 0.0  ;;  %v386_v18 = vpop.permute.xlu1 %385  ;;  %v2118_v15 = vor.u32 %v2218_v13, %v2115_v0  ;;  %v2027_v13 = vld [vmem:[%s3346_s5 + $0xf8] sm:$0xf0] }
 0x122   : > { %v408_v34 = vmul.f32 %v2694_v26, %v386_v18 }
 0x123   : > { %v646_v23 = vpack.c.bf16 %v637_v17, %v636_v16  ;;  %v2223_v16 = vld [vmem:[%s3346_s5 + $0x1b4] sm:$0xf0] }
 0x124   : > { %v2122_v17 = vor.u32 %v2223_v16, %v2121_v14 }
 0x125   : > { %1901 = vmatmul.msk.bf16.gmra.mxu2 %vm684_vm0, %v646_v23  ;;  %v2114_v23 = vor.u32 %v2222_v20, %v2113_v19 }
 0x127   : > { %1363 = vmatpush.bf16.msra.mxu1 %v2114_v23  ;;  %v1993_v23 = vld [vmem:[%s3346_s5 + $0x98] sm:$0xf] }
 0x12a   : > { %v468_v31 = vpop.permute.xlu1 %467 }
 0x12b   : > { %v489_v33 = vmul.f32 %v2692_v25, %v468_v31 }
 0x12d   : > { %v718_v37 = vpop.f32.mrf.mxu0  ;;  %v505_v38 = vadd.f32 %v489_v33, %v408_v34  ;;  %v2210_v33 = vld [vmem:[%s3346_s5 + $0x154] sm:$0xf] }
 0x12e   : > { %v719_v47 = vadd.f32 %v2983_v43, %v718_v37  ;;  %v2083_v34 = vld [vmem:[%s3346_s5 + $0x170] sm:$0xf0]  ;;  %v2215_v37 = vld [vmem:[%s3346_s5 + $0x174] sm:$0xf0] }
 0x12f   : > { %v602_v44 = vadd.f32 %v586_v41, %v505_v38  ;;  %v2086_v36 = vor.u32 %v2210_v33, %v2083_v34  ;;  %v2090_v38 = vor.u32 %v2215_v37, %v2089_v35  ;;  %v2214_v41 = vld [vmem:[%s3346_s5 + $0x16c] sm:$0xf0]  ;;  %v2187_v33 = vld [vmem:[%s3346_s5 + $0x9c] sm:$0xf] }
 0x130   : > { %v758_v52 = vmax.f32 %v719_v47, 0.0  ;;  %v1995_v34 = vld [vmem:[%s3346_s5 + $0xb8] sm:$0xf0] }
 0x131   : > { %v622_v51 = vadd.f32 %v2709_v40, %v602_v44  ;;  %v2082_v44 = vor.u32 %v2214_v41, %v2081_v39  ;;  %v1998_v35 = vor.u32 %v2187_v33, %v1995_v34 }
 0x133   : > { %v569_v45 = vpop.permute.xlu1 %568  ;;  %v638_v56 = vmax.f32 %v622_v51, 0.0  ;;  %1364 = vmatpush.bf16.msra.mxu1 %v2082_v44  ;;  %v2207_v51 = vld [vmem:[%s3346_s5 + $0x134] sm:$0xf0]  ;;  %v1955_v44 = vld [vmem:[%s3346_s5 + $0x70] sm:$0xf0] }
 0x134   : > { %v587_v48 = vmul.f32 %v2696_v29, %v569_v45  ;;  %v2091_v45 = vld [vmem:[%s3346_s5 + $0x178] sm:$0xf0] }
 0x135   : > { %v720_v49 = vpop.f32.mrf.mxu0 }
 0x136   : > { %v603_v50 = vadd.f32 %v587_v48, %v506_v46  ;;  %v721_v26 = vadd.f32 %v2983_v43, %v720_v49  ;;  %v2094_v46 = vor.u32 %v2211_v42, %v2091_v45  ;;  %v2202_v48 = vld [vmem:[%s3346_s5 + $0x114] sm:$0xf] }
 0x137   : > { %v2051_v49 = vld [vmem:[%s3346_s5 + $0x130] sm:$0xf0] }
 0x138   : > { %v623_v25 = vadd.f32 %v2709_v40, %v603_v50  ;;  %v759_v53 = vmax.f32 %v721_v26, 0.0  ;;  %v2147_v40 = vld [vmem:[%s3346_s5 + $0x1f0] sm:$0xf0]  ;;  %1511 = vmatpush.bf16.msra.mxu0 %v2094_v46  ;;  %v2057_v50 = vld [vmem:[%s3346_s5 + $0x118] sm:$0xf]  ;;  %v2054_v26 = vor.u32 %v2202_v48, %v2051_v49 }
 0x139   : > { %v2150_v59 = vor.u32 %v2226_v58, %v2147_v40  ;;  %v2049_v58 = vld [vmem:[%s3346_s5 + $0x110] sm:$0xf]  ;;  %v2178_v42 = vld [vmem:[%s3346_s5 + $0x54] sm:$0xf]  ;;  %v1961_v46 = vld [vmem:[%s3346_s5 + $0x58] sm:$0xf] }
 0x13a   : > { %v639_v54 = vmax.f32 %v623_v25, 0.0  ;;  %v2990_v55 = vpack.c.bf16 %v759_v53, %v758_v52  ;;  %v2058_v25 = vor.u32 %v2207_v51, %v2057_v50  ;;  %v2206_v40 = vld [vmem:[%s3346_s5 + $0x12c] sm:$0xf0]  ;;  %v1958_v45 = vor.u32 %v2178_v42, %v1955_v44  ;;  %v2179_v51 = vld [vmem:[%s3346_s5 + $0x5c] sm:$0xf] }
 0x13b   : > { %1411 = vmatpush.bf16.msra.mxu2 %v2150_v59  ;;  %v2203_v59 = vld [vmem:[%s3346_s5 + $0x11c] sm:$0xf]  ;;  %v2050_v60 = vor.u32 %v2206_v40, %v2049_v58  ;;  %v1953_v50 = vld [vmem:[%s3346_s5 + $0x50] sm:$0xf]  ;;  %v2170_v40 = vld [vmem:[%s3346_s5 + $0x14] sm:$0xf] }
 0x13c   : > { %1174 = vmatmul.bf16.vlgmr.msrb.gmra.mxu1 %v2990_v55  ;;  %1223 = vmatmul.bf16.vlgmr.msrb.gmra.mxu2 %v2990_v55  ;;  %v647_v57 = vpack.c.bf16 %v639_v54, %v638_v56  ;;  %v2062_v62 = vor.u32 %v2203_v59, %v2059_v61  ;;  %v1923_v59 = vld [vmem:[%s3346_s5 + $0x30] sm:$0xf0] }
 0x13d   : > { %1321 = vmatmul.bf16.vlgmr.msrb.gmra.mxu0 %v2990_v55  ;;  %1365 = vmatpush.bf16.msra.mxu1 %v2050_v60  ;;  %v1929_v60 = vld [vmem:[%s3346_s5 + $0x18] sm:$0xf]  ;;  %v1926_v61 = vor.u32 %v2170_v40, %v1923_v59 }
 0x13e   : > { %v723_v29 = vpop.f32.mrf.mxu0  ;;  %1902 = vmatmul.msk.bf16.vlgmr.msra.gmra.mxu3 %vm684_vm0, %v647_v57  ;;  %1512 = vmatpush.bf16.msra.mxu0 %v2062_v62  ;;  %v2175_v62 = vld [vmem:[%s3346_s5 + $0x34] sm:$0xf0] }
 0x13f   : > { %v724_v8 = vadd.f32 %v2983_v43, %v723_v29  ;;  %1460 = vmatpush.bf16.msra.mxu3 %v2154_v1  ;;  %1412 = vmatpush.bf16.msra.mxu2 %v2118_v15  ;;  %v2194_v1 = vld [vmem:[%s3346_s5 + $0xd4] sm:$0xf] }
 0x140   : > { %v2022_v6 = vor.u32 %v2194_v1, %v2019_v3 }
 0x141   : > { %v760_v63 = vmax.f32 %v724_v8, 0.0  ;;  %v2026_v8 = vor.u32 %v2199_v7, %v2025_v4  ;;  %v1930_v4 = vor.u32 %v2175_v62, %v1929_v60  ;;  %v2171_v7 = vld [vmem:[%s3346_s5 + $0x1c] sm:$0xf] }
 0x143   : > { %1461 = vmatpush.bf16.msra.mxu3 %v2122_v17  ;;  %1413 = vmatpush.bf16.msra.mxu2 %v2086_v36 }
 0x146   : > { %v725_v9 = vpop.f32.mrf.mxu0 }
 0x147   : > { %v726_v10 = vadd.f32 %v2983_v43, %v725_v9  ;;  %1462 = vmatpush.bf16.msra.mxu3 %v2090_v38  ;;  %1414 = vmatpush.bf16.msra.mxu2 %v2054_v26  ;;  %v2017_v9 = vld [vmem:[%s3346_s5 + $0xd0] sm:$0xf] }
 0x148   : > { %v2182_v26 = vld [vmem:[%s3346_s5 + $0x6c] sm:$0xf0] }
 0x149   : > { %v761_v11 = vmax.f32 %v726_v10, 0.0  ;;  %v2198_v10 = vld [vmem:[%s3346_s5 + $0xec] sm:$0xf0] }
 0x14b   : > { %v3022_v12 = vpack.c.bf16 %v761_v11, %v760_v63  ;;  %1463 = vmatpush.bf16.msra.mxu3 %v2058_v25  ;;  %1415 = vmatpush.bf16.msra.mxu2 %v2022_v6  ;;  %v2195_v63 = vld [vmem:[%s3346_s5 + $0xdc] sm:$0xf]  ;;  %v2018_v11 = vor.u32 %v2198_v10, %v2017_v9  ;;  %v2174_v6 = vld [vmem:[%s3346_s5 + $0x2c] sm:$0xf0] }
 0x14c   : > { %v2030_v0 = vor.u32 %v2195_v63, %v2027_v13  ;;  %v1963_v25 = vld [vmem:[%s3346_s5 + $0x78] sm:$0xf0] }
 0x14d   : > { %1179 = vmatmul.bf16.gmra.mxu1 %v3022_v12  ;;  %1228 = vmatmul.bf16.gmra.mxu2 %v3022_v12  ;;  %v1931_v10 = vld [vmem:[%s3346_s5 + $0x38] sm:$0xf0] }
 0x14e   : > { %1326 = vmatmul.bf16.gmra.mxu0 %v3022_v12  ;;  %1272 = vmatmul.bf16.vlgmr.msrb.gmra.mxu3 %v2990_v55  ;;  %v1934_v63 = vor.u32 %v2171_v7, %v1931_v10 }
 0x14f   : > { %1464 = vmatpush.bf16.msra.mxu3 %v2026_v8  ;;  %1366 = vmatpush.bf16.msra.mxu1 %v2018_v11 }
 0x150   : > { %1513 = vmatpush.bf16.msra.mxu0 %v2030_v0 }
 0x151   : > { %v728_v18 = vpop.f32.mrf.mxu1 }
 0x152   : > { %v729_v22 = vadd.f32 %v2983_v43, %v728_v18 }
 0x154   : > { %v762_v30 = vmax.f32 %v729_v22, 0.0  ;;  %v1987_v22 = vld [vmem:[%s3346_s5 + $0xb0] sm:$0xf0]  ;;  %1514 = vmatpush.bf16.msra.mxu0 %v1998_v35 }
 0x155   : > { %v1990_v2 = vor.u32 %v2186_v21, %v1987_v22 }
 0x157   : > { %1416 = vmatpush.bf16.msra.mxu2 %v1990_v2 }
 0x159   : > { %v730_v24 = vpop.f32.mrf.mxu1 }
 0x15a   : > { %v731_v28 = vadd.f32 %v2983_v43, %v730_v24  ;;  %v2191_v24 = vld [vmem:[%s3346_s5 + $0xb4] sm:$0xf0] }
 0x15b   : > { %1417 = vmatpush.bf16.msra.mxu2 %v1958_v45 }
 0x15c   : > { %v763_v31 = vmax.f32 %v731_v28, 0.0  ;;  %v2190_v28 = vld [vmem:[%s3346_s5 + $0xac] sm:$0xf0] }
 0x15e   : > { %v3054_v32 = vpack.c.bf16 %v763_v31, %v762_v30  ;;  %1277 = vmatmul.bf16.gmra.mxu3 %v3022_v12  ;;  %v1994_v30 = vor.u32 %v2191_v24, %v1993_v23  ;;  %v1986_v31 = vor.u32 %v2190_v28, %v1985_v27 }
 0x15f   : > { %1418 = vmatpush.bf16.msra.mxu2 %v1926_v61 }
 0x160   : > { %1184 = vmatmul.bf16.gmra.mxu1 %v3054_v32  ;;  %1233 = vmatmul.bf16.gmra.mxu2 %v3054_v32 }
 0x161   : > { %1331 = vmatmul.bf16.gmra.mxu0 %v3054_v32  ;;  %1465 = vmatpush.bf16.msra.mxu3 %v1994_v30 }
 0x162   : > { %1367 = vmatpush.bf16.msra.mxu1 %v1986_v31 }
 0x16a   : > { %v733_v47 = vpop.f32.mrf.mxu1 }
 0x16b   : > { %v734_v52 = vadd.f32 %v2983_v43, %v733_v47  ;;  %v2183_v47 = vld [vmem:[%s3346_s5 + $0x74] sm:$0xf0] }
 0x16c   : > { %v1962_v49 = vor.u32 %v2183_v47, %v1961_v46 }
 0x16d   : > { %v764_v56 = vmax.f32 %v734_v52, 0.0  ;;  %v1954_v52 = vor.u32 %v2182_v26, %v1953_v50 }
 0x16e   : > { %1282 = vmatmul.bf16.gmra.mxu3 %v3054_v32 }
 0x16f   : > { %1466 = vmatpush.bf16.msra.mxu3 %v1962_v49  ;;  %1368 = vmatpush.bf16.msra.mxu1 %v1954_v52 }
 0x172   : > { %v735_v53 = vpop.f32.mrf.mxu1 }
 0x173   : > { %v736_v54 = vadd.f32 %v2983_v43, %v735_v53  ;;  %v1966_v53 = vor.u32 %v2179_v51, %v1963_v25  ;;  %1467 = vmatpush.bf16.msra.mxu3 %v1930_v4 }
 0x175   : > { %v765_v57 = vmax.f32 %v736_v54, 0.0  ;;  %1515 = vmatpush.bf16.msra.mxu0 %v1966_v53 }
 0x177   : > { %v3099_v29 = vpack.c.bf16 %v765_v57, %v764_v56 }
 0x179   : > { %1189 = vmatmul.bf16.gmra.mxu1 %v3099_v29  ;;  %1238 = vmatmul.bf16.gmra.mxu2 %v3099_v29 }
 0x17a   : > { %1336 = vmatmul.bf16.gmra.mxu0 %v3099_v29 }
 0x17b   : > { %1516 = vmatpush.bf16.msra.mxu0 %v1934_v63 }
 0x17e   : > { %1287 = vmatmul.bf16.gmra.mxu3 %v3099_v29 }
 0x182   : > { %v738_v5 = vpop.f32.mrf.mxu2 }
 0x183   : > { %v739_v14 = vadd.f32 %v2983_v43, %v738_v5  ;;  %v1921_v5 = vld [vmem:[%s3346_s5 + $0x10] sm:$0xf] }
 0x184   : > { %v1922_v9 = vor.u32 %v2174_v6, %v1921_v5 }
 0x185   : > { %v766_v17 = vmax.f32 %v739_v14, 0.0 }
 0x186   : > { %1369 = vmatpush.bf16.msra.mxu1 %v1922_v9 }
 0x18a   : > { %v740_v15 = vpop.f32.mrf.mxu2 }
 0x18b   : > { %v741_v16 = vadd.f32 %v2983_v43, %v740_v15 }
 0x18d   : > { %v767_v18 = vmax.f32 %v741_v16, 0.0 }
 0x18f   : > { %v3143_v19 = vpack.c.bf16 %v767_v18, %v766_v17 }
 0x191   : > { %1194 = vmatmul.bf16.gmra.mxu1 %v3143_v19  ;;  %1243 = vmatmul.bf16.gmra.mxu2 %v3143_v19 }
 0x192   : > { %1292 = vmatmul.bf16.gmra.mxu3 %v3143_v19  ;;  %1341 = vmatmul.bf16.gmra.mxu0 %v3143_v19 }
 0x194   : > { %v743_v20 = vpop.f32.mrf.mxu2 }
 0x195   : > { %v744_v36 = vadd.f32 %v2983_v43, %v743_v20 }
 0x197   : > { %v768_v39 = vmax.f32 %v744_v36, 0.0 }
 0x19c   : > { %v745_v37 = vpop.f32.mrf.mxu2 }
 0x19d   : > { %v746_v38 = vadd.f32 %v2983_v43, %v745_v37 }
 0x19f   : > { %v769_v41 = vmax.f32 %v746_v38, 0.0 }
 0x1a1   : > { %v3187_v48 = vpack.c.bf16 %v769_v41, %v768_v39 }
 0x1a3   : > { %1199 = vmatmul.bf16.gmra.mxu1 %v3187_v48  ;;  %1248 = vmatmul.bf16.gmra.mxu2 %v3187_v48 }
 0x1a4   : > { %1297 = vmatmul.bf16.gmra.mxu3 %v3187_v48  ;;  %1346 = vmatmul.bf16.gmra.mxu0 %v3187_v48 }
 0x1a8   : > { %v748_v54 = vpop.f32.mrf.mxu2 }
 0x1a9   : > { %v749_v56 = vadd.f32 %v2983_v43, %v748_v54 }
 0x1ab   : > { %v770_v1 = vmax.f32 %v749_v56, 0.0 }
 0x1b0   : > { %v750_v57 = vpop.f32.mrf.mxu2 }
 0x1b1   : > { %v751_v58 = vadd.f32 %v2983_v43, %v750_v57 }
 0x1b3   : > { %v771_v3 = vmax.f32 %v751_v58, 0.0 }
 0x1b5   : > { %v3228_v8 = vpack.c.bf16 %v771_v3, %v770_v1 }
 0x1b7   : > { %1204 = vmatmul.bf16.gmra.mxu1 %v3228_v8  ;;  %1253 = vmatmul.bf16.gmra.mxu2 %v3228_v8 }
 0x1b8   : > { %1302 = vmatmul.bf16.gmra.mxu3 %v3228_v8  ;;  %1351 = vmatmul.bf16.gmra.mxu0 %v3228_v8 }
 0x1b9   : > { %v1175_v11 = vpop.f32.mrf.mxu1 }
 0x1ba   : > { %v1322_v13 = vpop.f32.mrf.mxu0 }
 0x1bf   : > { %v1224_v0 = vpop.f32.mrf.mxu2 }
 0x1c1   : > { %v753_v14 = vpop.f32.mrf.mxu3  ;;  %v1177_v15 = vpop.f32.mrf.mxu1 }
 0x1c2   : > { %v1324_v16 = vpop.f32.mrf.mxu0  ;;  %v754_v18 = vadd.f32 %v2983_v43, %v753_v14  ;;  %v1558_v20 = vmax.f32 %v1175_v11, %v1177_v15 }
 0x1c3   : > { %v1621_v22 = vmax.f32 %v1322_v13, %v1324_v16 }
 0x1c4   : > { %v772_v28 = vmax.f32 %v754_v18, 0.0 }
 0x1c7   : > { %v1226_v17 = vpop.f32.mrf.mxu2 }
 0x1c8   : > { %v1579_v34 = vmax.f32 %v1224_v0, %v1226_v17 }
 0x1c9   : > { %v755_v21 = vpop.f32.mrf.mxu3 }
 0x1ca   : > { %v756_v23 = vadd.f32 %v2983_v43, %v755_v21  ;;  %v1180_v2 = vpop.f32.mrf.mxu1 }
 0x1cb   : > { %v1559_v24 = vmax.f32 %v1558_v20, %v1180_v2  ;;  %v1327_v27 = vpop.f32.mrf.mxu0 }
 0x1cc   : > { %v773_v30 = vmax.f32 %v756_v23, 0.0  ;;  %v1622_v31 = vmax.f32 %v1621_v22, %v1327_v27 }
 0x1ce   : > { %v3239_v33 = vpack.c.bf16 %v773_v30, %v772_v28 }
 0x1d0   : > { %1209 = vmatmul.bf16.gmra.mxu1 %v3239_v33  ;;  %v1229_v35 = vpop.f32.mrf.mxu2  ;;  %1258 = vmatmul.bf16.gmra.mxu2 %v3239_v33 }
 0x1d1   : > { %v1580_v36 = vmax.f32 %v1579_v34, %v1229_v35  ;;  %1307 = vmatmul.bf16.gmra.mxu3 %v3239_v33  ;;  %1356 = vmatmul.bf16.gmra.mxu0 %v3239_v33  ;;  %v1273_v43 = vpop.f32.mrf.mxu3 }
 0x1d2   : > { %v1182_v37 = vpop.f32.mrf.mxu1 }
 0x1d3   : > { %v1329_v38 = vpop.f32.mrf.mxu0  ;;  %v1560_v42 = vmax.f32 %v1559_v24, %v1182_v37 }
 0x1d4   : > { %v1623_v44 = vmax.f32 %v1622_v31, %v1329_v38 }
 0x1d8   : > { %v1231_v41 = vpop.f32.mrf.mxu2 }
 0x1d9   : > { %v1275_v39 = vpop.f32.mrf.mxu3  ;;  %v1581_v51 = vmax.f32 %v1580_v36, %v1231_v41 }
 0x1da   : > { %v1600_v50 = vmax.f32 %v1273_v43, %v1275_v39 }
 0x1dd   : > { %v1185_v45 = vpop.f32.mrf.mxu1 }
 0x1de   : > { %v1561_v46 = vmax.f32 %v1560_v42, %v1185_v45  ;;  %v1332_v47 = vpop.f32.mrf.mxu0 }
 0x1df   : > { %v1624_v49 = vmax.f32 %v1623_v44, %v1332_v47 }
 0x1e0   : > { %1370 = vmatmul.bf16.vlgmr.msra.gmra.mxu1 %v2990_v55  ;;  %1419 = vmatmul.bf16.vlgmr.msra.gmra.mxu2 %v2990_v55 }
 0x1e1   : > { %1468 = vmatmul.bf16.vlgmr.msra.gmra.mxu3 %v2990_v55  ;;  %1517 = vmatmul.bf16.vlgmr.msra.gmra.mxu0 %v2990_v55  ;;  %v1278_v26 = vpop.f32.mrf.mxu3 }
 0x1e2   : > { %v1601_v52 = vmax.f32 %v1600_v50, %v1278_v26 }
 0x1e3   : > { %v1234_v25 = vpop.f32.mrf.mxu2 }
 0x1e4   : > { %v1582_v53 = vmax.f32 %v1581_v51, %v1234_v25 }
 0x1e5   : > { %v1187_v56 = vpop.f32.mrf.mxu1 }
 0x1e6   : > { %v1334_v57 = vpop.f32.mrf.mxu0  ;;  %v1562_v60 = vmax.f32 %v1561_v46, %v1187_v56 }
 0x1e7   : > { %v1625_v61 = vmax.f32 %v1624_v49, %v1334_v57 }
 0x1e9   : > { %v1280_v54 = vpop.f32.mrf.mxu3 }
 0x1ea   : > { %v1602_v58 = vmax.f32 %v1601_v52, %v1280_v54 }
 0x1eb   : > { %v1236_v55 = vpop.f32.mrf.mxu2 }
 0x1ec   : > { %v1583_v6 = vmax.f32 %v1582_v53, %v1236_v55 }
 0x1f0   : > { %1375 = vmatmul.bf16.gmra.mxu1 %v3022_v12  ;;  %1424 = vmatmul.bf16.gmra.mxu2 %v3022_v12 }
 0x1f1   : > { %1473 = vmatmul.bf16.gmra.mxu3 %v3022_v12  ;;  %1522 = vmatmul.bf16.gmra.mxu0 %v3022_v12  ;;  %v1283_v40 = vpop.f32.mrf.mxu3 }
 0x1f2   : > { %v1603_v59 = vmax.f32 %v1602_v58, %v1283_v40 }
 0x1f6   : > { %v1190_v62 = vpop.f32.mrf.mxu1 }
 0x1f7   : > { %v1563_v1 = vmax.f32 %v1562_v60, %v1190_v62  ;;  %v1337_v3 = vpop.f32.mrf.mxu0 }
 0x1f8   : > { %v1626_v4 = vmax.f32 %v1625_v61, %v1337_v3 }
 0x1f9   : > { %v1285_v5 = vpop.f32.mrf.mxu3 }
 0x1fa   : > { %v1604_v10 = vmax.f32 %v1603_v59, %v1285_v5 }
 0x1fc   : > { %v1239_v7 = vpop.f32.mrf.mxu2 }
 0x1fd   : > { %v1584_v9 = vmax.f32 %v1583_v6, %v1239_v7 }
 0x1fe   : > { %v1192_v11 = vpop.f32.mrf.mxu1 }
 0x1ff   : > { %v1339_v13 = vpop.f32.mrf.mxu0  ;;  %v1564_v14 = vmax.f32 %v1563_v1, %v1192_v11 }
 0x200   : > { %1380 = vmatmul.bf16.gmra.mxu1 %v3054_v32  ;;  %1429 = vmatmul.bf16.gmra.mxu2 %v3054_v32  ;;  %v1627_v16 = vmax.f32 %v1626_v4, %v1339_v13 }
 0x201   : > { %1478 = vmatmul.bf16.gmra.mxu3 %v3054_v32  ;;  %1527 = vmatmul.bf16.gmra.mxu0 %v3054_v32  ;;  %v1288_v12 = vpop.f32.mrf.mxu3 }
 0x202   : > { %v1605_v63 = vmax.f32 %v1604_v10, %v1288_v12 }
 0x204   : > { %v1241_v0 = vpop.f32.mrf.mxu2 }
 0x205   : > { %v1585_v32 = vmax.f32 %v1584_v9, %v1241_v0 }
 0x209   : > { %v1290_v15 = vpop.f32.mrf.mxu3 }
 0x20a   : > { %v1606_v22 = vmax.f32 %v1605_v63, %v1290_v15 }
 0x20e   : > { %v1195_v17 = vpop.f32.mrf.mxu1 }
 0x20f   : > { %v1565_v18 = vmax.f32 %v1564_v14, %v1195_v17  ;;  %v1342_v20 = vpop.f32.mrf.mxu0 }
 0x210   : > { %v1628_v21 = vmax.f32 %v1627_v16, %v1342_v20  ;;  %1385 = vmatmul.bf16.gmra.mxu1 %v3099_v29  ;;  %1434 = vmatmul.bf16.gmra.mxu2 %v3099_v29 }
 0x211   : > { %1483 = vmatmul.bf16.gmra.mxu3 %v3099_v29  ;;  %1532 = vmatmul.bf16.gmra.mxu0 %v3099_v29 }
 0x214   : > { %v1244_v23 = vpop.f32.mrf.mxu2 }
 0x215   : > { %v1586_v2 = vmax.f32 %v1585_v32, %v1244_v23  ;;  %v1293_v24 = vpop.f32.mrf.mxu3 }
 0x216   : > { %v1607_v27 = vmax.f32 %v1606_v22, %v1293_v24  ;;  %v1197_v28 = vpop.f32.mrf.mxu1 }
 0x217   : > { %v1566_v30 = vmax.f32 %v1565_v18, %v1197_v28  ;;  %v1344_v31 = vpop.f32.mrf.mxu0 }
 0x218   : > { %v1629_v34 = vmax.f32 %v1628_v21, %v1344_v31 }
 0x21c   : > { %v1246_v35 = vpop.f32.mrf.mxu2 }
 0x21d   : > { %v1587_v36 = vmax.f32 %v1586_v2, %v1246_v35  ;;  %v1295_v43 = vpop.f32.mrf.mxu3 }
 0x21e   : > { %v1608_v37 = vmax.f32 %v1607_v27, %v1295_v43 }
 0x220   : > { %v1200_v38 = vpop.f32.mrf.mxu1  ;;  %1390 = vmatmul.bf16.gmra.mxu1 %v3143_v19  ;;  %1439 = vmatmul.bf16.gmra.mxu2 %v3143_v19 }
 0x221   : > { %v1567_v29 = vmax.f32 %v1566_v30, %v1200_v38  ;;  %v1347_v39 = vpop.f32.mrf.mxu0  ;;  %1488 = vmatmul.bf16.gmra.mxu3 %v3143_v19  ;;  %1537 = vmatmul.bf16.gmra.mxu0 %v3143_v19 }
 0x222   : > { %v1630_v41 = vmax.f32 %v1629_v34, %v1347_v39 }
 0x226   : > { %v1249_v42 = vpop.f32.mrf.mxu2 }
 0x227   : > { %v1588_v44 = vmax.f32 %v1587_v36, %v1249_v42  ;;  %v1298_v45 = vpop.f32.mrf.mxu3 }
 0x228   : > { %v1609_v46 = vmax.f32 %v1608_v37, %v1298_v45  ;;  %v1202_v47 = vpop.f32.mrf.mxu1 }
 0x229   : > { %v1568_v49 = vmax.f32 %v1567_v29, %v1202_v47  ;;  %v1349_v50 = vpop.f32.mrf.mxu0 }
 0x22a   : > { %v1631_v26 = vmax.f32 %v1630_v41, %v1349_v50 }
 0x22e   : > { %v1251_v51 = vpop.f32.mrf.mxu2 }
 0x22f   : > { %v1589_v52 = vmax.f32 %v1588_v44, %v1251_v51  ;;  %v1300_v25 = vpop.f32.mrf.mxu3 }
 0x230   : > { %v1610_v53 = vmax.f32 %v1609_v46, %v1300_v25  ;;  %1395 = vmatmul.bf16.gmra.mxu1 %v3187_v48  ;;  %1444 = vmatmul.bf16.gmra.mxu2 %v3187_v48 }
 0x231   : > { %1493 = vmatmul.bf16.gmra.mxu3 %v3187_v48  ;;  %1542 = vmatmul.bf16.gmra.mxu0 %v3187_v48 }
 0x234   : > { %v1205_v19 = vpop.f32.mrf.mxu1 }
 0x235   : > { %v1569_v54 = vmax.f32 %v1568_v49, %v1205_v19  ;;  %v1352_v56 = vpop.f32.mrf.mxu0 }
 0x236   : > { %v1632_v57 = vmax.f32 %v1631_v26, %v1352_v56 }
 0x23a   : > { %v1254_v58 = vpop.f32.mrf.mxu2 }
 0x23b   : > { %v1590_v40 = vmax.f32 %v1589_v52, %v1254_v58  ;;  %v1303_v59 = vpop.f32.mrf.mxu3 }
 0x23c   : > { %v1611_v55 = vmax.f32 %v1610_v53, %v1303_v59  ;;  %v1207_v60 = vpop.f32.mrf.mxu1 }
 0x23d   : > { %v1570_v61 = vmax.f32 %v1569_v54, %v1207_v60  ;;  %v1354_v62 = vpop.f32.mrf.mxu0 }
 0x23e   : > { %v1633_v1 = vmax.f32 %v1632_v57, %v1354_v62 }
 0x240   : > { %1400 = vmatmul.bf16.gmra.mxu1 %v3228_v8  ;;  %1449 = vmatmul.bf16.gmra.mxu2 %v3228_v8 }
 0x241   : > { %1498 = vmatmul.bf16.gmra.mxu3 %v3228_v8  ;;  %1547 = vmatmul.bf16.gmra.mxu0 %v3228_v8 }
 0x242   : > { %v1256_v48 = vpop.f32.mrf.mxu2 }
 0x243   : > { %v1591_v3 = vmax.f32 %v1590_v40, %v1256_v48  ;;  %v1305_v4 = vpop.f32.mrf.mxu3 }
 0x244   : > { %v1612_v5 = vmax.f32 %v1611_v55, %v1305_v4 }
 0x24d   : > { %v1210_v6 = vpop.f32.mrf.mxu1 }
 0x24e   : > { %v1571_v7 = vmax.f32 %v1570_v61, %v1210_v6  ;;  %v1357_v9 = vpop.f32.mrf.mxu0 }
 0x24f   : > { %v1634_v10 = vmax.f32 %v1633_v1, %v1357_v9 }
 0x250   : > { %1405 = vmatmul.bf16.gmra.mxu1 %v3239_v33  ;;  %1454 = vmatmul.bf16.gmra.mxu2 %v3239_v33 }
 0x251   : > { %1503 = vmatmul.bf16.gmra.mxu3 %v3239_v33  ;;  %1552 = vmatmul.bf16.gmra.mxu0 %v3239_v33 }
 0x253   : > { %v1259_v12 = vpop.f32.mrf.mxu2 }
 0x254   : > { %v1592_v63 = vmax.f32 %v1591_v3, %v1259_v12  ;;  %v1308_v11 = vpop.f32.mrf.mxu3 }
 0x255   : > { %v1613_v8 = vmax.f32 %v1612_v5, %v1308_v11  ;;  %v1212_v13 = vpop.f32.mrf.mxu1 }
 0x256   : > { %v1572_v0 = vmax.f32 %v1571_v7, %v1212_v13  ;;  %v1359_v14 = vpop.f32.mrf.mxu0 }
 0x257   : > { %v1635_v15 = vmax.f32 %v1634_v10, %v1359_v14 }
 0x258   : > { %v1573_v16 = vrot.slane %v1572_v0, 4 }
 0x259   : > { %v1636_v17 = vrot.slane %v1635_v15, 4 }
 0x25a   : > { %v1574_v18 = vmax.f32 %v1572_v0, %v1573_v16 }
 0x25b   : > { %v1637_v20 = vmax.f32 %v1635_v15, %v1636_v17  ;;  %v1261_v21 = vpop.f32.mrf.mxu2 }
 0x25c   : > { %v1575_v32 = vrot.slane %v1574_v18, 2  ;;  %v1593_v22 = vmax.f32 %v1592_v63, %v1261_v21  ;;  %v1310_v23 = vpop.f32.mrf.mxu3 }
 0x25d   : > { %v1638_v2 = vrot.slane %v1637_v20, 2  ;;  %v1614_v24 = vmax.f32 %v1613_v8, %v1310_v23  ;;  %v1371_v27 = vpop.f32.mrf.mxu1 }
 0x25e   : > { %v1576_v33 = vmax.f32 %v1574_v18, %v1575_v32  ;;  %v1594_v28 = vrot.slane %v1593_v22, 4  ;;  %v1518_v30 = vpop.f32.mrf.mxu0 }
 0x25f   : > { %v1639_v31 = vmax.f32 %v1637_v20, %v1638_v2  ;;  %v1615_v34 = vrot.slane %v1614_v24, 4 }
 0x260   : > { %v1577_v35 = vrot.slane %v1576_v33, 1  ;;  %v1595_v36 = vmax.f32 %v1593_v22, %v1594_v28 }
 0x261   : > { %v1640_v43 = vrot.slane %v1639_v31, 1  ;;  %v1616_v37 = vmax.f32 %v1614_v24, %v1615_v34 }
 0x262   : > { %v3277_v38 = vmax.f32 %v1576_v33, %v1577_v35  ;;  %v1596_v29 = vrot.slane %v1595_v36, 2 }
 0x263   : > { %v3279_v39 = vmax.f32 %v1639_v31, %v1640_v43  ;;  %v1617_v41 = vrot.slane %v1616_v37, 2  ;;  %v1420_v42 = vpop.f32.mrf.mxu2 }
 0x264   : > { %v1597_v44 = vmax.f32 %v1595_v36, %v1596_v29  ;;  %v1469_v45 = vpop.f32.mrf.mxu3 }
 0x265   : > { %v1618_v46 = vmax.f32 %v1616_v37, %v1617_v41  ;;  %v1373_v47 = vpop.f32.mrf.mxu1 }
 0x266   : > { %v1598_v49 = vrot.slane %v1597_v44, 1  ;;  %v1642_v50 = vmax.f32 %v1371_v27, %v1373_v47  ;;  %v1520_v26 = vpop.f32.mrf.mxu0 }
 0x267   : > { %v1619_v51 = vrot.slane %v1618_v46, 1  ;;  %v1705_v52 = vmax.f32 %v1518_v30, %v1520_v26 }
 0x268   : > { %v3281_v25 = vmax.f32 %v1597_v44, %v1598_v49 }
 0x269   : > { %v3283_v53 = vmax.f32 %v1618_v46, %v1619_v51 }
 0x26b   : > { %v1422_v19 = vpop.f32.mrf.mxu2 }
 0x26c   : > { %v1663_v54 = vmax.f32 %v1420_v42, %v1422_v19  ;;  %v1471_v56 = vpop.f32.mrf.mxu3 }
 0x26d   : > { %v1684_v57 = vmax.f32 %v1469_v45, %v1471_v56  ;;  %v1376_v58 = vpop.f32.mrf.mxu1 }
 0x26e   : > { %v1643_v40 = vmax.f32 %v1642_v50, %v1376_v58  ;;  %v1523_v59 = vpop.f32.mrf.mxu0 }
 0x26f   : > { %v1706_v55 = vmax.f32 %v1705_v52, %v1523_v59 }
 0x273   : > { %v1425_v60 = vpop.f32.mrf.mxu2 }
 0x274   : > { %v1664_v61 = vmax.f32 %v1663_v54, %v1425_v60  ;;  %v1474_v62 = vpop.f32.mrf.mxu3 }
 0x275   : > { %v1685_v1 = vmax.f32 %v1684_v57, %v1474_v62  ;;  %v1378_v48 = vpop.f32.mrf.mxu1 }
 0x276   : > { %v1644_v3 = vmax.f32 %v1643_v40, %v1378_v48  ;;  %v1525_v4 = vpop.f32.mrf.mxu0 }
 0x277   : > { %v1707_v5 = vmax.f32 %v1706_v55, %v1525_v4 }
 0x27b   : > { %v1427_v6 = vpop.f32.mrf.mxu2 }
 0x27c   : > { %v1665_v7 = vmax.f32 %v1664_v61, %v1427_v6  ;;  %v1476_v9 = vpop.f32.mrf.mxu3 }
 0x27d   : > { %v1686_v10 = vmax.f32 %v1685_v1, %v1476_v9  ;;  %v1381_v12 = vpop.f32.mrf.mxu1 }
 0x27e   : > { %v1645_v63 = vmax.f32 %v1644_v3, %v1381_v12  ;;  %v1528_v11 = vpop.f32.mrf.mxu0 }
 0x27f   : > { %v1708_v8 = vmax.f32 %v1707_v5, %v1528_v11 }
 0x283   : > { %v1430_v13 = vpop.f32.mrf.mxu2 }
 0x284   : > { %v1666_v0 = vmax.f32 %v1665_v7, %v1430_v13  ;;  %v1479_v14 = vpop.f32.mrf.mxu3 }
 0x285   : > { %v1687_v15 = vmax.f32 %v1686_v10, %v1479_v14  ;;  %v1383_v16 = vpop.f32.mrf.mxu1 }
 0x286   : > { %v1530_v17 = vpop.f32.mrf.mxu0  ;;  %v1646_v51 = vmax.f32 %v1645_v63, %v1383_v16 }
 0x287   : > { %v1709_v52 = vmax.f32 %v1708_v8, %v1530_v17 }
 0x28b   : > { %v1432_v18 = vpop.f32.mrf.mxu2 }
 0x28c   : > { %v1481_v20 = vpop.f32.mrf.mxu3  ;;  %v1667_v60 = vmax.f32 %v1666_v0, %v1432_v18 }
 0x28d   : > { %v1386_v21 = vpop.f32.mrf.mxu1  ;;  %v1688_v62 = vmax.f32 %v1687_v15, %v1481_v20 }
 0x28e   : > { %v1533_v32 = vpop.f32.mrf.mxu0  ;;  %v1647_v54 = vmax.f32 %v1646_v51, %v1386_v21 }
 0x28f   : > { %v1710_v57 = vmax.f32 %v1709_v52, %v1533_v32 }
 0x293   : > { %v1435_v22 = vpop.f32.mrf.mxu2 }
 0x294   : > { %v1484_v23 = vpop.f32.mrf.mxu3  ;;  %v1668_v48 = vmax.f32 %v1667_v60, %v1435_v22 }
 0x295   : > { %v1388_v2 = vpop.f32.mrf.mxu1  ;;  %v1689_v4 = vmax.f32 %v1688_v62, %v1484_v23 }
 0x296   : > { %v1535_v24 = vpop.f32.mrf.mxu0  ;;  %v1648_v40 = vmax.f32 %v1647_v54, %v1388_v2 }
 0x297   : > { %v1711_v55 = vmax.f32 %v1710_v57, %v1535_v24 }
 0x29b   : > { %v1437_v27 = vpop.f32.mrf.mxu2 }
 0x29c   : > { %v1486_v33 = vpop.f32.mrf.mxu3  ;;  %v1669_v7 = vmax.f32 %v1668_v48, %v1437_v27 }
 0x29d   : > { %v1391_v28 = vpop.f32.mrf.mxu1  ;;  %v1690_v12 = vmax.f32 %v1689_v4, %v1486_v33 }
 0x29e   : > { %v1538_v30 = vpop.f32.mrf.mxu0  ;;  %v1649_v61 = vmax.f32 %v1648_v40, %v1391_v28 }
 0x29f   : > { %v1712_v1 = vmax.f32 %v1711_v55, %v1538_v30 }
 0x2a3   : > { %v1440_v31 = vpop.f32.mrf.mxu2 }
 0x2a4   : > { %v1489_v34 = vpop.f32.mrf.mxu3  ;;  %v1670_v8 = vmax.f32 %v1669_v7, %v1440_v31 }
 0x2a5   : > { %v1393_v35 = vpop.f32.mrf.mxu1  ;;  %v1691_v16 = vmax.f32 %v1690_v12, %v1489_v34 }
 0x2a6   : > { %v1540_v36 = vpop.f32.mrf.mxu0  ;;  %v1650_v3 = vmax.f32 %v1649_v61, %v1393_v35 }
 0x2a7   : > { %v1713_v5 = vmax.f32 %v1712_v1, %v1540_v36 }
 0x2ab   : > { %v1442_v43 = vpop.f32.mrf.mxu2 }
 0x2ac   : > { %v1491_v37 = vpop.f32.mrf.mxu3  ;;  %v1671_v0 = vmax.f32 %v1670_v8, %v1442_v43 }
 0x2ad   : > { %v1396_v29 = vpop.f32.mrf.mxu1  ;;  %v1692_v15 = vmax.f32 %v1691_v16, %v1491_v37 }
 0x2ae   : > { %v1543_v41 = vpop.f32.mrf.mxu0  ;;  %v1651_v9 = vmax.f32 %v1650_v3, %v1396_v29 }
 0x2af   : > { %v1714_v63 = vmax.f32 %v1713_v5, %v1543_v41 }
 0x2b3   : > { %v1445_v42 = vpop.f32.mrf.mxu2 }
 0x2b4   : > { %v1494_v44 = vpop.f32.mrf.mxu3  ;;  %v1672_v21 = vmax.f32 %v1671_v0, %v1445_v42 }
 0x2b5   : > { %v1398_v45 = vpop.f32.mrf.mxu1  ;;  %v1693_v22 = vmax.f32 %v1692_v15, %v1494_v44 }
 0x2b6   : > { %v1545_v46 = vpop.f32.mrf.mxu0  ;;  %v1652_v13 = vmax.f32 %v1651_v9, %v1398_v45 }
 0x2b7   : > { %v1715_v17 = vmax.f32 %v1714_v63, %v1545_v46 }
 0x2bb   : > { %v1447_v47 = vpop.f32.mrf.mxu2 }
 0x2bc   : > { %v1496_v49 = vpop.f32.mrf.mxu3  ;;  %v1673_v24 = vmax.f32 %v1672_v21, %v1447_v47 }
 0x2bd   : > { %v1401_v50 = vpop.f32.mrf.mxu1  ;;  %v1694_v33 = vmax.f32 %v1693_v22, %v1496_v49 }
 0x2be   : > { %v1548_v26 = vpop.f32.mrf.mxu0  ;;  %v1653_v18 = vmax.f32 %v1652_v13, %v1401_v50 }
 0x2bf   : > { %v1716_v20 = vmax.f32 %v1715_v17, %v1548_v26 }
 0x2c3   : > { %v1450_v19 = vpop.f32.mrf.mxu2 }
 0x2c4   : > { %v1499_v56 = vpop.f32.mrf.mxu3  ;;  %v1674_v31 = vmax.f32 %v1673_v24, %v1450_v19 }
 0x2c5   : > { %v1403_v58 = vpop.f32.mrf.mxu1  ;;  %v1695_v34 = vmax.f32 %v1694_v33, %v1499_v56 }
 0x2c6   : > { %v1550_v59 = vpop.f32.mrf.mxu0  ;;  %v1654_v32 = vmax.f32 %v1653_v18, %v1403_v58 }
 0x2c7   : > { %v1717_v23 = vmax.f32 %v1716_v20, %v1550_v59 }
 0x2cb   : > { %v1452_v6 = vpop.f32.mrf.mxu2 }
 0x2cc   : > { %v1501_v10 = vpop.f32.mrf.mxu3  ;;  %v1675_v43 = vmax.f32 %v1674_v31, %v1452_v6 }
 0x2cd   : > { %v1406_v11 = vpop.f32.mrf.mxu1  ;;  %v1696_v37 = vmax.f32 %v1695_v34, %v1501_v10 }
 0x2ce   : > { %v1553_v14 = vpop.f32.mrf.mxu0  ;;  %v1655_v27 = vmax.f32 %v1654_v32, %v1406_v11 }
 0x2cf   : > { %v1718_v30 = vmax.f32 %v1717_v23, %v1553_v14 }
 0x2d3   : > { %v1455_v2 = vpop.f32.mrf.mxu2 }
 0x2d4   : > { %v1504_v28 = vpop.f32.mrf.mxu3  ;;  %v1676_v42 = vmax.f32 %v1675_v43, %v1455_v2 }
 0x2d5   : > { %v1408_v35 = vpop.f32.mrf.mxu1  ;;  %v1697_v44 = vmax.f32 %v1696_v37, %v1504_v28 }
 0x2d6   : > { %v1656_v36 = vmax.f32 %v1655_v27, %v1408_v35  ;;  %v1555_v29 = vpop.f32.mrf.mxu0 }
 0x2d7   : > { %v1719_v41 = vmax.f32 %v1718_v30, %v1555_v29 }
 0x2d8   : > { %v1657_v45 = vrot.slane %v1656_v36, 4 }
 0x2d9   : > { %v1720_v46 = vrot.slane %v1719_v41, 4 }
 0x2da   : > { %v1658_v50 = vmax.f32 %v1656_v36, %v1657_v45 }
 0x2db   : > { %v1721_v26 = vmax.f32 %v1719_v41, %v1720_v46  ;;  %v1457_v51 = vpop.f32.mrf.mxu2 }
 0x2dc   : > { %v1659_v47 = vrot.slane %v1658_v50, 2  ;;  %v1677_v52 = vmax.f32 %v1676_v42, %v1457_v51  ;;  %v1506_v54 = vpop.f32.mrf.mxu3 }
 0x2dd   : > { %v1722_v49 = vrot.slane %v1721_v26, 2  ;;  %v1698_v57 = vmax.f32 %v1697_v44, %v1506_v54 }
 0x2de   : > { %v1660_v58 = vmax.f32 %v1658_v50, %v1659_v47  ;;  %v1678_v19 = vrot.slane %v1677_v52, 4 }
 0x2df   : > { %v1723_v40 = vmax.f32 %v1721_v26, %v1722_v49  ;;  %v1699_v56 = vrot.slane %v1698_v57, 4 }
 0x2e0   : > { %v1661_v59 = vrot.slane %v1660_v58, 1  ;;  %v1679_v55 = vmax.f32 %v1677_v52, %v1678_v19 }
 0x2e1   : > { %v1724_v60 = vrot.slane %v1723_v40, 1  ;;  %v1700_v61 = vmax.f32 %v1698_v57, %v1699_v56 }
 0x2e2   : > { %v1662_v62 = vmax.f32 %v1660_v58, %v1661_v59  ;;  %v1680_v1 = vrot.slane %v1679_v55, 2 }
 0x2e3   : > { %v1725_v48 = vmax.f32 %v1723_v40, %v1724_v60  ;;  %v1701_v3 = vrot.slane %v1700_v61, 2 }
 0x2e4   : > { %v1681_v4 = vmax.f32 %v1679_v55, %v1680_v1 }
 0x2e5   : > { %v1702_v5 = vmax.f32 %v1700_v61, %v1701_v3  ;;  %1729 = sbr.rel (%p2159_p4) target bundleno = 748 (0x2ec), region = 52 }
 0x2e6   : > { %v1682_v6 = vrot.slane %v1681_v4, 1 }
 0x2e7   : > { %v1703_v7 = vrot.slane %v1702_v5, 1 }
 0x2e8   : > { %v1683_v9 = vmax.f32 %v1681_v4, %v1682_v6 }
 0x2e9   : > { %v1704_v10 = vmax.f32 %v1702_v5, %v1703_v7 }
 0x2ea   : > { %v2509_v12 = vmov -inf  }
 0x2eb   : > { %1730 = vst [vmem:[%s3286_s30] sm:$0xff] %v2509_v12 }
 0x2ec PF: > { %v1740_v63 = vrot.slane %v3281_v25, 7  ;;  %v1741_v11 = vrot.slane %v3283_v53, 6  ;;  %v1742_v8 = vrot.slane %v3279_v39, 5  ;;  %v1743_v13 = vrot.slane %v1662_v62, 4  ;;  %s2161_s24 = sshll.u32 %s2489_s25, 3  ;;  %s1777_s25 = sshll.u32 %s3286_s30, 4  ;;  %s1778_s25 = int_to_ptr.vmem [resolvable:$true] %s1777_s25 }
 0x2ed   : > { %v1744_v14 = vrot.slane %v1683_v9, 3  ;;  %v1745_v16 = vrot.slane %v1704_v10, 2  ;;  %v1746_v17 = vrot.slane %v1725_v48, 1  ;;  %vm1747_vm1 = vcmask 1040384   ;;  %s1775_s13 = scalar_lea.hbm %s3347_s6, %s2161_s24  ;;  %s3354_s15 = sand.u32 1, %s2477_s22  }
 0x2ee   : > { %v1748_v0 = vsel %vm1747_vm1, %v3277_v38, %v1740_v63  ;;  %vm1749_vm2 = vcmask 1042434   ;;  %vm1751_vm3 = vcmask 1041408   ;;  %vm1753_vm4 = vcmask 1044484   ;;  %s1779_s12 = sshll.u32 %s1775_s13, 4  ;;  %s1765_s16 = scalar_lea.sflag [#allocation4], %s3354_s15  ;;  %s1780_s12 = int_to_ptr.hbm [resolvable:$true] %s1779_s12 }
 0x2ef   : > { %v1750_v25 = vsel %vm1749_vm2, %v1741_v11, %v1742_v8  ;;  %v1754_v39 = vsel %vm1753_vm4, %v1743_v13, %v1744_v14  ;;  %vm1755_vm5 = vcmask 1046534   ;;  %vm1757_vm6 = vcmask 1045508   ;;  %s2417_s18 = sshra.s32 %s1780_s12, 4  ;;  %s2423_s20 = scalar_lea.hbm %s3347_s6, 16  ;;  %s2418_s18 = int_to_ptr.hbm [resolvable:$true] %s2417_s18 }
 0x2f0   : > { %v1752_v18 = vsel %vm1751_vm3, %v1748_v0, %v1750_v25  ;;  %v1756_v15 = vsel %vm1755_vm5, %v1745_v16, %v1746_v17  ;;  %vm1759_vm7 = vcmask 1043456   ;;  %s2419_s19 = scalar_lea.hbm %s2418_s18, 8  ;;  %p2424_p8 = scmp.lt.s32.totalorder %s2418_s18, %s3347_s6 }
 0x2f1   : > { %v1758_v38 = vsel %vm1757_vm6, %v1754_v39, %v1756_v15  ;;  %p2420_p5 = scmp.ne.s32.totalorder %s2418_s18, %s2419_s19  ;;  %p2425_p10 = scmp.lt.s32.totalorder %s2423_s20, %s2419_s19 }
 0x2f2   : > { %v1731_v53 = vld [vmem:[%s3286_s30] sm:$0xff]  ;;  %v1760_v20 = vsel %vm1759_vm7, %v1752_v18, %v1758_v38 }
 0x2f3   : > { %v1762_v21 = vmax.f32 %v1731_v53, %v1760_v20  ;;  %p2421_p6 = pnand %p2420_p5, %p2595_p3  ;;  %p2426_p11 = por %p2425_p10, %p2424_p8 }
 0x2f5   : > { %1763 = vst [vmem:[%s3286_s30] sm:$0xff] %v1762_v21  ;;  %p2422_p7 = pneg %p2421_p6 }
 0x2f7   : > { %p2427_p12 = pnand %p2426_p11, %p2422_p7 }
 0x2f9   : > { %2430 = shalt.err (!%p2427_p12)
}
 0x2fa   : > { %2248 = dma.vmem_to_hbm [thread:$0]  (%p2595_p3), %s1778_s25, 128, %s1780_s12, %s1765_s16  }
 0x2fb PF: > { %p2260_p13 = scmp.ge.s32.totalorder %s2501_s28, 2  ;;  %s1791_s30 = sand.u32 1, %s2473_s21  }
 0x2fc   : > { %s1792_s29 = scalar_lea.sflag [#allocation4], %s1791_s30 }
 0x2fd   : > { %p2255_p0 = pnand %p2260_p13, %p2605_p9 }
 0x2ff   : > { %p2256_p1 = pneg %p2255_p0 }
 0x301   : > { %2468 = dma.done.wait (%p2256_p1), %s1792_s29, 128  }
 0x302   : > { %2470 = vsyncadd (%p2256_p1), %s1792_s29, 4294967168  ;;  %s20_s28 = sadd.s32 1, %s2501_s28   ;;  %s3355_s21 = smov %s2477_s22 }
 0x303   : > { %p17_p2 = scmp.ge.s32.totalorder %s20_s28, 6   ;;  %s3356_s22 = smov %s2481_s23 }
 0x304   : > { %s3357_s23 = smov %s2621_s17  ;;  %s3358_s24 = smov %s2493_s26 }
 0x305   : > { %s3359_s25 = smov %s2497_s27  ;;  %s3360_s26 = smov %s3363_s7 }
 0x306   : > { %s3361_s27 = smov %s3367_s8  ;;  %19 = sbr.rel (!%p17_p2) target bundleno = 8 (0x8), region = 88 }
 0x30b   :  { %1798 = vsyncpa [#allocation3], 1 }
 0x30c   :  { %1800 = vsyncpa [#allocation3 + $0x1], 1 }
 0x30d   :  { %1801 = vsyncpa [#allocation4], 1 }
 0x30e   :  { %1803 = vsyncpa [#allocation4 + $0x1], 1 }

</bundles_post_ra>
